<compile_context>
chip_gen: v7x
topology: tpu7x:2x2x1
jax: 0.10.0
libtpu: 0.0.40
codegen_flags: <defaults>
</compile_context>

<pallas_src>
import functools
import math

import jax
import jax.numpy as jnp
from jax import lax
from jax.experimental import pallas as pl
from jax.experimental.pallas import tpu as pltpu


def _layer_norm(x, g, b, eps=1e-5):
    mu = jnp.mean(x, axis=-1, keepdims=True)
    var = jnp.mean((x - mu) ** 2, axis=-1, keepdims=True)
    return (x - mu) * lax.rsqrt(var + eps) * g + b


def fused_cws_kernel(seq_lens_ref,                              # SMEM prefetch (B,)
                     emb_ref, gold_oh_ref,                      # per-sample blocks
                     w_in_ref, ow_ref, w1_ref, w2_ref, fc2_w_ref,   # bf16 weights
                     bias_ref, trans_ref,                       # small f32 params
                     loss_ref,                                  # (1, 8, 128) out
                     feats_ref,                                 # VMEM scratch (L, T)
                     *, num_heads):
    _, L, E = emb_ref.shape
    H = w1_ref.shape[0]
    T = trans_ref.shape[0]
    dk = H // num_heads

    b = pl.program_id(0)
    seq_len = seq_lens_ref[b]

    # ---- packed small parameters (one (12, H) operand) ---------------------------
    bias = bias_ref[...]
    b_h, b_q, b_k, b_v = bias[0:1], bias[1:2], bias[2:3], bias[3:4]
    o_b = bias[4:5]
    ln1_g, ln1_b = bias[5:6], bias[6:7]
    ffn_b1, ffn_b2 = bias[7:8], bias[8:9]
    ln2_g, ln2_b = bias[9:10], bias[10:11]
    fc2_b = bias[11:12, :T]

    # ---- fused fc1 + QKV projection (scale already folded into Q on host) --------
    x = emb_ref[0]                                                        # (L, E) bf16
    hq = jnp.dot(x, w_in_ref[...], preferred_element_type=jnp.float32)    # (L, 4H)
    h = hq[:, 0:H] + b_h
    q = hq[:, H:2 * H] + b_q
    k = hq[:, 2 * H:3 * H] + b_k
    v = hq[:, 3 * H:4 * H] + b_v

    # ---- block-diagonal self-attention (this step only sees its own sample) ------
    kpos = lax.broadcasted_iota(jnp.int32, (1, L), 1)
    key_bias = jnp.where(kpos < seq_len, 0.0, -1e30)                      # (1, L)

    head_outs = []
    for hd in range(num_heads):
        lo = hd * dk
        qh = q[:, lo:lo + dk].astype(jnp.bfloat16)
        kh = k[:, lo:lo + dk].astype(jnp.bfloat16)
        vh = v[:, lo:lo + dk].astype(jnp.bfloat16)
        s = lax.dot_general(qh, kh, (((1,), (1,)), ((), ())),
                            preferred_element_type=jnp.float32) + key_bias
        m = jnp.max(s, axis=-1, keepdims=True)
        e = jnp.exp(s - m)
        p = e * pl.reciprocal(jnp.sum(e, axis=-1, keepdims=True), approx=True)
        head_outs.append(jnp.dot(p.astype(jnp.bfloat16), vh,
                                 preferred_element_type=jnp.float32))
    att = jnp.concatenate(head_outs, axis=-1)                             # (L, H)
    att = jnp.dot(att.astype(jnp.bfloat16), ow_ref[...],
                  preferred_element_type=jnp.float32) + o_b

    y = _layer_norm(att + h, ln1_g, ln1_b)
    f = jnp.maximum(jnp.dot(y.astype(jnp.bfloat16), w1_ref[...],
                            preferred_element_type=jnp.float32) + ffn_b1, 0.0)
    f = jnp.dot(f.astype(jnp.bfloat16), w2_ref[...],
                preferred_element_type=jnp.float32) + ffn_b2
    z = _layer_norm(f + y, ln2_g, ln2_b)

    rpos = lax.broadcasted_iota(jnp.int32, (L, 1), 0)
    z = z * (rpos < seq_len).astype(jnp.float32)                          # zero padded rows

    feats = jnp.dot(z.astype(jnp.bfloat16), fc2_w_ref[...],
                    preferred_element_type=jnp.float32) + fc2_b           # (L, T)
    feats_ref[...] = feats

    # ---- CRF negative log-likelihood (gold one-hot pre-masked on host; gold
    # transitions added on host after the kernel) ----------------------------------
    ge = jnp.sum(feats * gold_oh_ref[0], axis=0, keepdims=True)           # (1, T)
    gold_emit = jnp.sum(ge, axis=1, keepdims=True)                        # (1, 1)

    trans = trans_ref[...]                                                # (T, T)
    c = jnp.max(trans, axis=0, keepdims=True)                             # (1, T)
    exp_trans = jnp.exp(trans - c)                                        # column-max shift

    alpha0 = feats[0:1, :]                                                # assumes seq_len >= 1

    def step(t, alpha):
        emit_t = feats_ref[pl.ds(t, 1), :]                                # (1, T)
        m_a = jnp.max(alpha, axis=1, keepdims=True)
        prod = jnp.dot(jnp.exp(alpha - m_a), exp_trans,
                       preferred_element_type=jnp.float32)
        return jnp.log(prod) + m_a + c + emit_t

    # only iterate over this sample's valid timesteps
    alpha = lax.fori_loop(1, seq_len, step, alpha0)

    amax = jnp.max(alpha, axis=1, keepdims=True)
    norm = jnp.log(jnp.sum(jnp.exp(alpha - amax), axis=1, keepdims=True)) + amax  # (1, 1)

    loss_ref[0] = jnp.broadcast_to(norm - gold_emit, (8, 128))


def transformer_cws_forward(params, chars, target, seq_lens):
    B, L = chars.shape
    E = params['embed'].shape[1]
    H = params['fc1_w'].shape[1]
    T = params['fc2_w'].shape[1]
    NH = params['qw'].shape[0]
    dk = params['qw'].shape[2]
    scale = 1.0 / math.sqrt(dk)

    seq_lens = seq_lens.astype(jnp.int32)
    # seq_len_to_byte_mask (assumes max(seq_lens) == L, as the data pipeline guarantees)
    mask = (jnp.arange(L)[None, :] < seq_lens[:, None]).astype(jnp.float32)   # (B, L)

    emb = jnp.take(params['embed'], chars, axis=0).astype(jnp.bfloat16)       # (B, L, E)
    # TODO(synk): nn.Dropout(embed_drop_p, inplace=True) modeled in eval mode (identity).

    # ---- fold fc1 into the QKV projection; fold 1/sqrt(dk) into Q ------------------
    wq = params['qw'].transpose(1, 0, 2).reshape(H, NH * dk) * scale
    wk = params['kw'].transpose(1, 0, 2).reshape(H, NH * dk)
    wv = params['vw'].transpose(1, 0, 2).reshape(H, NH * dk)
    wqkv = jnp.concatenate([wq, wk, wv], axis=1)                              # (H, 3H)
    w_in = jnp.concatenate([params['fc1_w'], params['fc1_w'] @ wqkv], axis=1)  # (E, 4H)

    qb = params['qb'].transpose(1, 0, 2).reshape(1, NH * dk) * scale
    kb = params['kb'].transpose(1, 0, 2).reshape(1, NH * dk)
    vb = params['vb'].transpose(1, 0, 2).reshape(1, NH * dk)
    b_qkv = params['fc1_b'] @ wqkv + jnp.concatenate([qb, kb, vb], axis=1)    # (1, 3H)

    ow_full = params['ow'].reshape(NH * dk, H)                                # (H, H)

    fc2_b_pad = jnp.pad(params['fc2_b'], ((0, 0), (0, H - T)))                # assumes T <= H
    bias_pack = jnp.concatenate([
        params['fc1_b'], b_qkv.reshape(3, H),
        params['ob'],
        params['ln1_g'], params['ln1_b'],
        params['ffn_b1'], params['ffn_b2'],
        params['ln2_g'], params['ln2_b'],
        fc2_b_pad], axis=0)                                                   # (12, H)

    # ---- CRF gold path hoisted to host (pure function of params / tags / mask) ----
    tags = target.astype(jnp.int32)
    gold_oh = jax.nn.one_hot(tags, T, dtype=jnp.float32) * mask[:, :, None]   # (B, L, T)
    gold_trans = jnp.sum(params['trans'][tags[:, :-1], tags[:, 1:]] * mask[:, 1:],
                         axis=1)                                              # (B,)

    bf16 = jnp.bfloat16
    operands = (emb, gold_oh,
                w_in.astype(bf16), ow_full.astype(bf16),
                params['ffn_w1'].astype(bf16), params['ffn_w2'].astype(bf16),
                params['fc2_w'].astype(bf16),
                bias_pack, params['trans'])

    def _const(shape):
        zeros = (0,) * len(shape)
        return pl.BlockSpec(shape, lambda b, sl: zeros)

    grid_spec = pltpu.PrefetchScalarGridSpec(
        num_scalar_prefetch=1,
        grid=(B,),
        in_specs=[
            pl.BlockSpec((1, L, E), lambda b, sl: (b, 0, 0)),     # emb (per sample)
            pl.BlockSpec((1, L, T), lambda b, sl: (b, 0, 0)),     # gold one-hot
            _const((E, 4 * H)),                                   # fused fc1|QKV weight
            _const((H, H)),                                       # attn output proj
            _const((H, H)),                                       # ffn w1
            _const((H, H)),                                       # ffn w2
            _const((H, T)),                                       # fc2
            _const((12, H)),                                      # packed biases / LN
            _const((T, T)),                                       # CRF transitions
        ],
        out_specs=pl.BlockSpec((1, 8, 128), lambda b, sl: (b, 0, 0)),
        scratch_shapes=[pltpu.VMEM((L, T), jnp.float32)],
    )

    out = pl.pallas_call(
        functools.partial(fused_cws_kernel, num_heads=NH),
        out_shape=jax.ShapeDtypeStruct((B, 8, 128), jnp.float32),
        grid_spec=grid_spec,
        compiler_params=pltpu.CompilerParams(
            dimension_semantics=("parallel",),
            vmem_limit_bytes=32 * 1024 * 1024),
    )(seq_lens, *operands)

    losses = out[:, 0, 0] - gold_trans                                        # (B,)
    return {'seq_lens': seq_lens, 'loss': jnp.mean(losses)}


def init_params(key, V, E, H, NH, T):
    dk = H // NH
    ks = jax.random.split(key, 18)

    def n(k, shape, scale=0.1):
        return jax.random.normal(k, shape, jnp.float32) * scale

    return dict(
        embed=n(ks[0], (V, E), 1.0),
        fc1_w=n(ks[1], (E, H)), fc1_b=n(ks[2], (1, H)),
        qw=n(ks[3], (NH, H, dk)), qb=n(ks[4], (NH, 1, dk)),
        kw=n(ks[5], (NH, H, dk)), kb=n(ks[6], (NH, 1, dk)),
        vw=n(ks[7], (NH, H, dk)), vb=n(ks[8], (NH, 1, dk)),
        ow=n(ks[9], (NH, dk, H)), ob=n(ks[10], (1, H)),
        ln1_g=jnp.ones((1, H), jnp.float32), ln1_b=jnp.zeros((1, H), jnp.float32),
        ffn_w1=n(ks[11], (H, H)), ffn_b1=n(ks[12], (1, H)),
        ffn_w2=n(ks[13], (H, H)), ffn_b2=n(ks[14], (1, H)),
        ln2_g=jnp.ones((1, H), jnp.float32), ln2_b=jnp.zeros((1, H), jnp.float32),
        fc2_w=n(ks[15], (H, T)), fc2_b=n(ks[16], (1, T)),
        trans=n(ks[17], (T, T), 1.0),   # CRF transitions (constraints only affect viterbi, not loss)
    )


if __name__ == "__main__":
    B, L = 2, 8
    V, E, H, NH, T = 50, 32, 32, 8, 4   # vocab, embed_dim, hidden_size, num_heads, tag_size

    key = jax.random.PRNGKey(0)
    kp, kc, kt = jax.random.split(key, 3)
    params = init_params(kp, V, E, H, NH, T)

    chars = jax.random.randint(kc, (B, L), 0, V, dtype=jnp.int32)
    target = jax.random.randint(kt, (B, L), 0, T, dtype=jnp.int32)
    seq_lens = jnp.array([L, 5], dtype=jnp.int32)   # max(seq_lens) == L

    fwd = jax.jit(transformer_cws_forward)
    out = fwd(params, chars, target, seq_lens)
    jax.block_until_ready(out['loss'])
    assert out['loss'].shape == () and jnp.isfinite(out['loss'])
    print("KERNEL_OK")
</pallas_src>

<mosaic_0001>
module attributes {stable_mosaic.version = 11 : i64} {
  func.func @fused_cws_kernel(%arg0: i32, %arg1: memref<2xi32, #tpu.memory_space<smem>>, %arg2: memref<1x8x32xbf16, #tpu.memory_space<vmem>>, %arg3: memref<1x8x4xf32, #tpu.memory_space<vmem>>, %arg4: memref<32x128xbf16, #tpu.memory_space<vmem>>, %arg5: memref<32x32xbf16, #tpu.memory_space<vmem>>, %arg6: memref<32x32xbf16, #tpu.memory_space<vmem>>, %arg7: memref<32x32xbf16, #tpu.memory_space<vmem>>, %arg8: memref<32x4xbf16, #tpu.memory_space<vmem>>, %arg9: memref<12x32xf32, #tpu.memory_space<vmem>>, %arg10: memref<4x4xf32, #tpu.memory_space<vmem>>, %arg11: memref<1x8x128xf32, #tpu.memory_space<vmem>>, %arg12: memref<8x4xf32, #tpu.memory_space<vmem>>) attributes {dimension_semantics = [#tpu.dimension_semantics<parallel>], iteration_bounds = array<i64: 2>, scalar_prefetch = 1 : i64, scratch_operands = 1 : i64, tpu.core_type = #tpu.core_type<tc>, window_params = [{transform_indices = @transform_0, window_bounds = array<i64: 1, 8, 32>}, {transform_indices = @transform_1, window_bounds = array<i64: 1, 8, 4>}, {pipeline_mode = #tpu.pipeline_mode<synchronous>, transform_indices = @transform_2, window_bounds = array<i64: 32, 128>}, {pipeline_mode = #tpu.pipeline_mode<synchronous>, transform_indices = @transform_3, window_bounds = array<i64: 32, 32>}, {pipeline_mode = #tpu.pipeline_mode<synchronous>, transform_indices = @transform_4, window_bounds = array<i64: 32, 32>}, {pipeline_mode = #tpu.pipeline_mode<synchronous>, transform_indices = @transform_5, window_bounds = array<i64: 32, 32>}, {pipeline_mode = #tpu.pipeline_mode<synchronous>, transform_indices = @transform_6, window_bounds = array<i64: 32, 4>}, {pipeline_mode = #tpu.pipeline_mode<synchronous>, transform_indices = @transform_7, window_bounds = array<i64: 12, 32>}, {pipeline_mode = #tpu.pipeline_mode<synchronous>, transform_indices = @transform_8, window_bounds = array<i64: 4, 4>}, {transform_indices = @transform_9, window_bounds = array<i64: 1, 8, 128>}]} {
    %0 = arith.index_cast %arg0 : i32 to index
    %1 = memref.load %arg1[%0] : memref<2xi32, #tpu.memory_space<smem>>
    %c0 = arith.constant 0 : index
    %c0_0 = arith.constant 0 : index
    %2 = vector.load %arg9[%c0, %c0_0] : memref<12x32xf32, #tpu.memory_space<vmem>>, vector<12x32xf32>
    %3 = vector.extract_strided_slice %2 {offsets = [0, 0], sizes = [1, 32], strides = [1, 1]} : vector<12x32xf32> to vector<1x32xf32>
    %4 = vector.extract_strided_slice %2 {offsets = [1, 0], sizes = [1, 32], strides = [1, 1]} : vector<12x32xf32> to vector<1x32xf32>
    %5 = vector.extract_strided_slice %2 {offsets = [2, 0], sizes = [1, 32], strides = [1, 1]} : vector<12x32xf32> to vector<1x32xf32>
    %6 = vector.extract_strided_slice %2 {offsets = [3, 0], sizes = [1, 32], strides = [1, 1]} : vector<12x32xf32> to vector<1x32xf32>
    %7 = vector.extract_strided_slice %2 {offsets = [4, 0], sizes = [1, 32], strides = [1, 1]} : vector<12x32xf32> to vector<1x32xf32>
    %8 = vector.extract_strided_slice %2 {offsets = [5, 0], sizes = [1, 32], strides = [1, 1]} : vector<12x32xf32> to vector<1x32xf32>
    %9 = vector.extract_strided_slice %2 {offsets = [6, 0], sizes = [1, 32], strides = [1, 1]} : vector<12x32xf32> to vector<1x32xf32>
    %10 = vector.extract_strided_slice %2 {offsets = [7, 0], sizes = [1, 32], strides = [1, 1]} : vector<12x32xf32> to vector<1x32xf32>
    %11 = vector.extract_strided_slice %2 {offsets = [8, 0], sizes = [1, 32], strides = [1, 1]} : vector<12x32xf32> to vector<1x32xf32>
    %12 = vector.extract_strided_slice %2 {offsets = [9, 0], sizes = [1, 32], strides = [1, 1]} : vector<12x32xf32> to vector<1x32xf32>
    %13 = vector.extract_strided_slice %2 {offsets = [10, 0], sizes = [1, 32], strides = [1, 1]} : vector<12x32xf32> to vector<1x32xf32>
    %14 = vector.extract_strided_slice %2 {offsets = [11, 0], sizes = [1, 4], strides = [1, 1]} : vector<12x32xf32> to vector<1x4xf32>
    %c0_1 = arith.constant 0 : index
    %c0_2 = arith.constant 0 : index
    %c0_3 = arith.constant 0 : index
    %15 = vector.load %arg2[%c0_1, %c0_2, %c0_3] : memref<1x8x32xbf16, #tpu.memory_space<vmem>>, vector<1x8x32xbf16>
    %16 = vector.shape_cast %15 : vector<1x8x32xbf16> to vector<8x32xbf16>
    %c0_4 = arith.constant 0 : index
    %c0_5 = arith.constant 0 : index
    %17 = vector.load %arg4[%c0_4, %c0_5] : memref<32x128xbf16, #tpu.memory_space<vmem>>, vector<32x128xbf16>
    %cst = arith.constant dense<0.000000e+00> : vector<8x128xf32>
    %18 = tpu.matmul %16, %17, %cst {dimension_numbers = #tpu.dot_dimension_numbers<[1], [0], [0], [1], [0, 0, 1, 1], [], []>} : vector<8x32xbf16>, vector<32x128xbf16>, vector<8x128xf32> -> vector<8x128xf32>
    %19 = vector.extract_strided_slice %18 {offsets = [0, 0], sizes = [8, 32], strides = [1, 1]} : vector<8x128xf32> to vector<8x32xf32>
    %20 = vector.broadcast %3 : vector<1x32xf32> to vector<8x32xf32>
    %21 = arith.addf %19, %20 : vector<8x32xf32>
    %22 = vector.extract_strided_slice %18 {offsets = [0, 32], sizes = [8, 32], strides = [1, 1]} : vector<8x128xf32> to vector<8x32xf32>
    %23 = vector.broadcast %4 : vector<1x32xf32> to vector<8x32xf32>
    %24 = arith.addf %22, %23 : vector<8x32xf32>
    %25 = vector.extract_strided_slice %18 {offsets = [0, 64], sizes = [8, 32], strides = [1, 1]} : vector<8x128xf32> to vector<8x32xf32>
    %26 = vector.broadcast %5 : vector<1x32xf32> to vector<8x32xf32>
    %27 = arith.addf %25, %26 : vector<8x32xf32>
    %28 = vector.extract_strided_slice %18 {offsets = [0, 96], sizes = [8, 32], strides = [1, 1]} : vector<8x128xf32> to vector<8x32xf32>
    %29 = vector.broadcast %6 : vector<1x32xf32> to vector<8x32xf32>
    %30 = arith.addf %28, %29 : vector<8x32xf32>
    %31 = tpu.iota {dimensions = array<i32: 1>} : vector<1x8xi32>
    %32 = vector.broadcast %1 : i32 to vector<1x8xi32>
    %33 = arith.cmpi slt, %31, %32 : vector<1x8xi32>
    %cst_6 = arith.constant 0.000000e+00 : f32
    %cst_7 = arith.constant -1.000000e+30 : f32
    %34 = vector.broadcast %cst_6 : f32 to vector<1x8xf32>
    %35 = vector.broadcast %cst_7 : f32 to vector<1x8xf32>
    %36 = arith.select %33, %34, %35 : vector<1x8xi1>, vector<1x8xf32>
    %37 = vector.extract_strided_slice %24 {offsets = [0, 0], sizes = [8, 4], strides = [1, 1]} : vector<8x32xf32> to vector<8x4xf32>
    %38 = arith.truncf %37 : vector<8x4xf32> to vector<8x4xbf16>
    %39 = vector.extract_strided_slice %27 {offsets = [0, 0], sizes = [8, 4], strides = [1, 1]} : vector<8x32xf32> to vector<8x4xf32>
    %40 = arith.truncf %39 : vector<8x4xf32> to vector<8x4xbf16>
    %41 = vector.extract_strided_slice %30 {offsets = [0, 0], sizes = [8, 4], strides = [1, 1]} : vector<8x32xf32> to vector<8x4xf32>
    %42 = arith.truncf %41 : vector<8x4xf32> to vector<8x4xbf16>
    %cst_8 = arith.constant dense<0.000000e+00> : vector<8x8xf32>
    %43 = tpu.matmul %38, %40, %cst_8 {dimension_numbers = #tpu.dot_dimension_numbers<[1], [1], [0], [0], [0, 0, 1, 0], [], []>} : vector<8x4xbf16>, vector<8x4xbf16>, vector<8x8xf32> -> vector<8x8xf32>
    %44 = vector.broadcast %36 : vector<1x8xf32> to vector<8x8xf32>
    %45 = arith.addf %43, %44 : vector<8x8xf32>
    %cst_9 = arith.constant dense<0xFF800000> : vector<8xf32>
    %46 = vector.multi_reduction <maximumf>, %45, %cst_9 [1] : vector<8x8xf32> to vector<8xf32>
    %47 = vector.shape_cast %46 : vector<8xf32> to vector<8x1xf32>
    %48 = vector.broadcast %47 : vector<8x1xf32> to vector<8x8xf32>
    %49 = arith.subf %45, %48 : vector<8x8xf32>
    %50 = math.exp %49 : vector<8x8xf32>
    %cst_10 = arith.constant dense<0.000000e+00> : vector<8xf32>
    %51 = vector.multi_reduction <add>, %50, %cst_10 [1] : vector<8x8xf32> to vector<8xf32>
    %52 = vector.shape_cast %51 : vector<8xf32> to vector<8x1xf32>
    %53 = tpu.reciprocal %52 {approx = true} : vector<8x1xf32> -> vector<8x1xf32>
    %54 = vector.broadcast %53 : vector<8x1xf32> to vector<8x8xf32>
    %55 = arith.mulf %50, %54 : vector<8x8xf32>
    %56 = arith.truncf %55 : vector<8x8xf32> to vector<8x8xbf16>
    %cst_11 = arith.constant dense<0.000000e+00> : vector<8x4xf32>
    %57 = tpu.matmul %56, %42, %cst_11 {dimension_numbers = #tpu.dot_dimension_numbers<[1], [0], [0], [1], [0, 0, 1, 1], [], []>} : vector<8x8xbf16>, vector<8x4xbf16>, vector<8x4xf32> -> vector<8x4xf32>
    %58 = vector.extract_strided_slice %24 {offsets = [0, 4], sizes = [8, 4], strides = [1, 1]} : vector<8x32xf32> to vector<8x4xf32>
    %59 = arith.truncf %58 : vector<8x4xf32> to vector<8x4xbf16>
    %60 = vector.extract_strided_slice %27 {offsets = [0, 4], sizes = [8, 4], strides = [1, 1]} : vector<8x32xf32> to vector<8x4xf32>
    %61 = arith.truncf %60 : vector<8x4xf32> to vector<8x4xbf16>
    %62 = vector.extract_strided_slice %30 {offsets = [0, 4], sizes = [8, 4], strides = [1, 1]} : vector<8x32xf32> to vector<8x4xf32>
    %63 = arith.truncf %62 : vector<8x4xf32> to vector<8x4xbf16>
    %cst_12 = arith.constant dense<0.000000e+00> : vector<8x8xf32>
    %64 = tpu.matmul %59, %61, %cst_12 {dimension_numbers = #tpu.dot_dimension_numbers<[1], [1], [0], [0], [0, 0, 1, 0], [], []>} : vector<8x4xbf16>, vector<8x4xbf16>, vector<8x8xf32> -> vector<8x8xf32>
    %65 = vector.broadcast %36 : vector<1x8xf32> to vector<8x8xf32>
    %66 = arith.addf %64, %65 : vector<8x8xf32>
    %cst_13 = arith.constant dense<0xFF800000> : vector<8xf32>
    %67 = vector.multi_reduction <maximumf>, %66, %cst_13 [1] : vector<8x8xf32> to vector<8xf32>
    %68 = vector.shape_cast %67 : vector<8xf32> to vector<8x1xf32>
    %69 = vector.broadcast %68 : vector<8x1xf32> to vector<8x8xf32>
    %70 = arith.subf %66, %69 : vector<8x8xf32>
    %71 = math.exp %70 : vector<8x8xf32>
    %cst_14 = arith.constant dense<0.000000e+00> : vector<8xf32>
    %72 = vector.multi_reduction <add>, %71, %cst_14 [1] : vector<8x8xf32> to vector<8xf32>
    %73 = vector.shape_cast %72 : vector<8xf32> to vector<8x1xf32>
    %74 = tpu.reciprocal %73 {approx = true} : vector<8x1xf32> -> vector<8x1xf32>
    %75 = vector.broadcast %74 : vector<8x1xf32> to vector<8x8xf32>
    %76 = arith.mulf %71, %75 : vector<8x8xf32>
    %77 = arith.truncf %76 : vector<8x8xf32> to vector<8x8xbf16>
    %cst_15 = arith.constant dense<0.000000e+00> : vector<8x4xf32>
    %78 = tpu.matmul %77, %63, %cst_15 {dimension_numbers = #tpu.dot_dimension_numbers<[1], [0], [0], [1], [0, 0, 1, 1], [], []>} : vector<8x8xbf16>, vector<8x4xbf16>, vector<8x4xf32> -> vector<8x4xf32>
    %79 = vector.extract_strided_slice %24 {offsets = [0, 8], sizes = [8, 4], strides = [1, 1]} : vector<8x32xf32> to vector<8x4xf32>
    %80 = arith.truncf %79 : vector<8x4xf32> to vector<8x4xbf16>
    %81 = vector.extract_strided_slice %27 {offsets = [0, 8], sizes = [8, 4], strides = [1, 1]} : vector<8x32xf32> to vector<8x4xf32>
    %82 = arith.truncf %81 : vector<8x4xf32> to vector<8x4xbf16>
    %83 = vector.extract_strided_slice %30 {offsets = [0, 8], sizes = [8, 4], strides = [1, 1]} : vector<8x32xf32> to vector<8x4xf32>
    %84 = arith.truncf %83 : vector<8x4xf32> to vector<8x4xbf16>
    %cst_16 = arith.constant dense<0.000000e+00> : vector<8x8xf32>
    %85 = tpu.matmul %80, %82, %cst_16 {dimension_numbers = #tpu.dot_dimension_numbers<[1], [1], [0], [0], [0, 0, 1, 0], [], []>} : vector<8x4xbf16>, vector<8x4xbf16>, vector<8x8xf32> -> vector<8x8xf32>
    %86 = vector.broadcast %36 : vector<1x8xf32> to vector<8x8xf32>
    %87 = arith.addf %85, %86 : vector<8x8xf32>
    %cst_17 = arith.constant dense<0xFF800000> : vector<8xf32>
    %88 = vector.multi_reduction <maximumf>, %87, %cst_17 [1] : vector<8x8xf32> to vector<8xf32>
    %89 = vector.shape_cast %88 : vector<8xf32> to vector<8x1xf32>
    %90 = vector.broadcast %89 : vector<8x1xf32> to vector<8x8xf32>
    %91 = arith.subf %87, %90 : vector<8x8xf32>
    %92 = math.exp %91 : vector<8x8xf32>
    %cst_18 = arith.constant dense<0.000000e+00> : vector<8xf32>
    %93 = vector.multi_reduction <add>, %92, %cst_18 [1] : vector<8x8xf32> to vector<8xf32>
    %94 = vector.shape_cast %93 : vector<8xf32> to vector<8x1xf32>
    %95 = tpu.reciprocal %94 {approx = true} : vector<8x1xf32> -> vector<8x1xf32>
    %96 = vector.broadcast %95 : vector<8x1xf32> to vector<8x8xf32>
    %97 = arith.mulf %92, %96 : vector<8x8xf32>
    %98 = arith.truncf %97 : vector<8x8xf32> to vector<8x8xbf16>
    %cst_19 = arith.constant dense<0.000000e+00> : vector<8x4xf32>
    %99 = tpu.matmul %98, %84, %cst_19 {dimension_numbers = #tpu.dot_dimension_numbers<[1], [0], [0], [1], [0, 0, 1, 1], [], []>} : vector<8x8xbf16>, vector<8x4xbf16>, vector<8x4xf32> -> vector<8x4xf32>
    %100 = vector.extract_strided_slice %24 {offsets = [0, 12], sizes = [8, 4], strides = [1, 1]} : vector<8x32xf32> to vector<8x4xf32>
    %101 = arith.truncf %100 : vector<8x4xf32> to vector<8x4xbf16>
    %102 = vector.extract_strided_slice %27 {offsets = [0, 12], sizes = [8, 4], strides = [1, 1]} : vector<8x32xf32> to vector<8x4xf32>
    %103 = arith.truncf %102 : vector<8x4xf32> to vector<8x4xbf16>
    %104 = vector.extract_strided_slice %30 {offsets = [0, 12], sizes = [8, 4], strides = [1, 1]} : vector<8x32xf32> to vector<8x4xf32>
    %105 = arith.truncf %104 : vector<8x4xf32> to vector<8x4xbf16>
    %cst_20 = arith.constant dense<0.000000e+00> : vector<8x8xf32>
    %106 = tpu.matmul %101, %103, %cst_20 {dimension_numbers = #tpu.dot_dimension_numbers<[1], [1], [0], [0], [0, 0, 1, 0], [], []>} : vector<8x4xbf16>, vector<8x4xbf16>, vector<8x8xf32> -> vector<8x8xf32>
    %107 = vector.broadcast %36 : vector<1x8xf32> to vector<8x8xf32>
    %108 = arith.addf %106, %107 : vector<8x8xf32>
    %cst_21 = arith.constant dense<0xFF800000> : vector<8xf32>
    %109 = vector.multi_reduction <maximumf>, %108, %cst_21 [1] : vector<8x8xf32> to vector<8xf32>
    %110 = vector.shape_cast %109 : vector<8xf32> to vector<8x1xf32>
    %111 = vector.broadcast %110 : vector<8x1xf32> to vector<8x8xf32>
    %112 = arith.subf %108, %111 : vector<8x8xf32>
    %113 = math.exp %112 : vector<8x8xf32>
    %cst_22 = arith.constant dense<0.000000e+00> : vector<8xf32>
    %114 = vector.multi_reduction <add>, %113, %cst_22 [1] : vector<8x8xf32> to vector<8xf32>
    %115 = vector.shape_cast %114 : vector<8xf32> to vector<8x1xf32>
    %116 = tpu.reciprocal %115 {approx = true} : vector<8x1xf32> -> vector<8x1xf32>
    %117 = vector.broadcast %116 : vector<8x1xf32> to vector<8x8xf32>
    %118 = arith.mulf %113, %117 : vector<8x8xf32>
    %119 = arith.truncf %118 : vector<8x8xf32> to vector<8x8xbf16>
    %cst_23 = arith.constant dense<0.000000e+00> : vector<8x4xf32>
    %120 = tpu.matmul %119, %105, %cst_23 {dimension_numbers = #tpu.dot_dimension_numbers<[1], [0], [0], [1], [0, 0, 1, 1], [], []>} : vector<8x8xbf16>, vector<8x4xbf16>, vector<8x4xf32> -> vector<8x4xf32>
    %121 = vector.extract_strided_slice %24 {offsets = [0, 16], sizes = [8, 4], strides = [1, 1]} : vector<8x32xf32> to vector<8x4xf32>
    %122 = arith.truncf %121 : vector<8x4xf32> to vector<8x4xbf16>
    %123 = vector.extract_strided_slice %27 {offsets = [0, 16], sizes = [8, 4], strides = [1, 1]} : vector<8x32xf32> to vector<8x4xf32>
    %124 = arith.truncf %123 : vector<8x4xf32> to vector<8x4xbf16>
    %125 = vector.extract_strided_slice %30 {offsets = [0, 16], sizes = [8, 4], strides = [1, 1]} : vector<8x32xf32> to vector<8x4xf32>
    %126 = arith.truncf %125 : vector<8x4xf32> to vector<8x4xbf16>
    %cst_24 = arith.constant dense<0.000000e+00> : vector<8x8xf32>
    %127 = tpu.matmul %122, %124, %cst_24 {dimension_numbers = #tpu.dot_dimension_numbers<[1], [1], [0], [0], [0, 0, 1, 0], [], []>} : vector<8x4xbf16>, vector<8x4xbf16>, vector<8x8xf32> -> vector<8x8xf32>
    %128 = vector.broadcast %36 : vector<1x8xf32> to vector<8x8xf32>
    %129 = arith.addf %127, %128 : vector<8x8xf32>
    %cst_25 = arith.constant dense<0xFF800000> : vector<8xf32>
    %130 = vector.multi_reduction <maximumf>, %129, %cst_25 [1] : vector<8x8xf32> to vector<8xf32>
    %131 = vector.shape_cast %130 : vector<8xf32> to vector<8x1xf32>
    %132 = vector.broadcast %131 : vector<8x1xf32> to vector<8x8xf32>
    %133 = arith.subf %129, %132 : vector<8x8xf32>
    %134 = math.exp %133 : vector<8x8xf32>
    %cst_26 = arith.constant dense<0.000000e+00> : vector<8xf32>
    %135 = vector.multi_reduction <add>, %134, %cst_26 [1] : vector<8x8xf32> to vector<8xf32>
    %136 = vector.shape_cast %135 : vector<8xf32> to vector<8x1xf32>
    %137 = tpu.reciprocal %136 {approx = true} : vector<8x1xf32> -> vector<8x1xf32>
    %138 = vector.broadcast %137 : vector<8x1xf32> to vector<8x8xf32>
    %139 = arith.mulf %134, %138 : vector<8x8xf32>
    %140 = arith.truncf %139 : vector<8x8xf32> to vector<8x8xbf16>
    %cst_27 = arith.constant dense<0.000000e+00> : vector<8x4xf32>
    %141 = tpu.matmul %140, %126, %cst_27 {dimension_numbers = #tpu.dot_dimension_numbers<[1], [0], [0], [1], [0, 0, 1, 1], [], []>} : vector<8x8xbf16>, vector<8x4xbf16>, vector<8x4xf32> -> vector<8x4xf32>
    %142 = vector.extract_strided_slice %24 {offsets = [0, 20], sizes = [8, 4], strides = [1, 1]} : vector<8x32xf32> to vector<8x4xf32>
    %143 = arith.truncf %142 : vector<8x4xf32> to vector<8x4xbf16>
    %144 = vector.extract_strided_slice %27 {offsets = [0, 20], sizes = [8, 4], strides = [1, 1]} : vector<8x32xf32> to vector<8x4xf32>
    %145 = arith.truncf %144 : vector<8x4xf32> to vector<8x4xbf16>
    %146 = vector.extract_strided_slice %30 {offsets = [0, 20], sizes = [8, 4], strides = [1, 1]} : vector<8x32xf32> to vector<8x4xf32>
    %147 = arith.truncf %146 : vector<8x4xf32> to vector<8x4xbf16>
    %cst_28 = arith.constant dense<0.000000e+00> : vector<8x8xf32>
    %148 = tpu.matmul %143, %145, %cst_28 {dimension_numbers = #tpu.dot_dimension_numbers<[1], [1], [0], [0], [0, 0, 1, 0], [], []>} : vector<8x4xbf16>, vector<8x4xbf16>, vector<8x8xf32> -> vector<8x8xf32>
    %149 = vector.broadcast %36 : vector<1x8xf32> to vector<8x8xf32>
    %150 = arith.addf %148, %149 : vector<8x8xf32>
    %cst_29 = arith.constant dense<0xFF800000> : vector<8xf32>
    %151 = vector.multi_reduction <maximumf>, %150, %cst_29 [1] : vector<8x8xf32> to vector<8xf32>
    %152 = vector.shape_cast %151 : vector<8xf32> to vector<8x1xf32>
    %153 = vector.broadcast %152 : vector<8x1xf32> to vector<8x8xf32>
    %154 = arith.subf %150, %153 : vector<8x8xf32>
    %155 = math.exp %154 : vector<8x8xf32>
    %cst_30 = arith.constant dense<0.000000e+00> : vector<8xf32>
    %156 = vector.multi_reduction <add>, %155, %cst_30 [1] : vector<8x8xf32> to vector<8xf32>
    %157 = vector.shape_cast %156 : vector<8xf32> to vector<8x1xf32>
    %158 = tpu.reciprocal %157 {approx = true} : vector<8x1xf32> -> vector<8x1xf32>
    %159 = vector.broadcast %158 : vector<8x1xf32> to vector<8x8xf32>
    %160 = arith.mulf %155, %159 : vector<8x8xf32>
    %161 = arith.truncf %160 : vector<8x8xf32> to vector<8x8xbf16>
    %cst_31 = arith.constant dense<0.000000e+00> : vector<8x4xf32>
    %162 = tpu.matmul %161, %147, %cst_31 {dimension_numbers = #tpu.dot_dimension_numbers<[1], [0], [0], [1], [0, 0, 1, 1], [], []>} : vector<8x8xbf16>, vector<8x4xbf16>, vector<8x4xf32> -> vector<8x4xf32>
    %163 = vector.extract_strided_slice %24 {offsets = [0, 24], sizes = [8, 4], strides = [1, 1]} : vector<8x32xf32> to vector<8x4xf32>
    %164 = arith.truncf %163 : vector<8x4xf32> to vector<8x4xbf16>
    %165 = vector.extract_strided_slice %27 {offsets = [0, 24], sizes = [8, 4], strides = [1, 1]} : vector<8x32xf32> to vector<8x4xf32>
    %166 = arith.truncf %165 : vector<8x4xf32> to vector<8x4xbf16>
    %167 = vector.extract_strided_slice %30 {offsets = [0, 24], sizes = [8, 4], strides = [1, 1]} : vector<8x32xf32> to vector<8x4xf32>
    %168 = arith.truncf %167 : vector<8x4xf32> to vector<8x4xbf16>
    %cst_32 = arith.constant dense<0.000000e+00> : vector<8x8xf32>
    %169 = tpu.matmul %164, %166, %cst_32 {dimension_numbers = #tpu.dot_dimension_numbers<[1], [1], [0], [0], [0, 0, 1, 0], [], []>} : vector<8x4xbf16>, vector<8x4xbf16>, vector<8x8xf32> -> vector<8x8xf32>
    %170 = vector.broadcast %36 : vector<1x8xf32> to vector<8x8xf32>
    %171 = arith.addf %169, %170 : vector<8x8xf32>
    %cst_33 = arith.constant dense<0xFF800000> : vector<8xf32>
    %172 = vector.multi_reduction <maximumf>, %171, %cst_33 [1] : vector<8x8xf32> to vector<8xf32>
    %173 = vector.shape_cast %172 : vector<8xf32> to vector<8x1xf32>
    %174 = vector.broadcast %173 : vector<8x1xf32> to vector<8x8xf32>
    %175 = arith.subf %171, %174 : vector<8x8xf32>
    %176 = math.exp %175 : vector<8x8xf32>
    %cst_34 = arith.constant dense<0.000000e+00> : vector<8xf32>
    %177 = vector.multi_reduction <add>, %176, %cst_34 [1] : vector<8x8xf32> to vector<8xf32>
    %178 = vector.shape_cast %177 : vector<8xf32> to vector<8x1xf32>
    %179 = tpu.reciprocal %178 {approx = true} : vector<8x1xf32> -> vector<8x1xf32>
    %180 = vector.broadcast %179 : vector<8x1xf32> to vector<8x8xf32>
    %181 = arith.mulf %176, %180 : vector<8x8xf32>
    %182 = arith.truncf %181 : vector<8x8xf32> to vector<8x8xbf16>
    %cst_35 = arith.constant dense<0.000000e+00> : vector<8x4xf32>
    %183 = tpu.matmul %182, %168, %cst_35 {dimension_numbers = #tpu.dot_dimension_numbers<[1], [0], [0], [1], [0, 0, 1, 1], [], []>} : vector<8x8xbf16>, vector<8x4xbf16>, vector<8x4xf32> -> vector<8x4xf32>
    %184 = vector.extract_strided_slice %24 {offsets = [0, 28], sizes = [8, 4], strides = [1, 1]} : vector<8x32xf32> to vector<8x4xf32>
    %185 = arith.truncf %184 : vector<8x4xf32> to vector<8x4xbf16>
    %186 = vector.extract_strided_slice %27 {offsets = [0, 28], sizes = [8, 4], strides = [1, 1]} : vector<8x32xf32> to vector<8x4xf32>
    %187 = arith.truncf %186 : vector<8x4xf32> to vector<8x4xbf16>
    %188 = vector.extract_strided_slice %30 {offsets = [0, 28], sizes = [8, 4], strides = [1, 1]} : vector<8x32xf32> to vector<8x4xf32>
    %189 = arith.truncf %188 : vector<8x4xf32> to vector<8x4xbf16>
    %cst_36 = arith.constant dense<0.000000e+00> : vector<8x8xf32>
    %190 = tpu.matmul %185, %187, %cst_36 {dimension_numbers = #tpu.dot_dimension_numbers<[1], [1], [0], [0], [0, 0, 1, 0], [], []>} : vector<8x4xbf16>, vector<8x4xbf16>, vector<8x8xf32> -> vector<8x8xf32>
    %191 = vector.broadcast %36 : vector<1x8xf32> to vector<8x8xf32>
    %192 = arith.addf %190, %191 : vector<8x8xf32>
    %cst_37 = arith.constant dense<0xFF800000> : vector<8xf32>
    %193 = vector.multi_reduction <maximumf>, %192, %cst_37 [1] : vector<8x8xf32> to vector<8xf32>
    %194 = vector.shape_cast %193 : vector<8xf32> to vector<8x1xf32>
    %195 = vector.broadcast %194 : vector<8x1xf32> to vector<8x8xf32>
    %196 = arith.subf %192, %195 : vector<8x8xf32>
    %197 = math.exp %196 : vector<8x8xf32>
    %cst_38 = arith.constant dense<0.000000e+00> : vector<8xf32>
    %198 = vector.multi_reduction <add>, %197, %cst_38 [1] : vector<8x8xf32> to vector<8xf32>
    %199 = vector.shape_cast %198 : vector<8xf32> to vector<8x1xf32>
    %200 = tpu.reciprocal %199 {approx = true} : vector<8x1xf32> -> vector<8x1xf32>
    %201 = vector.broadcast %200 : vector<8x1xf32> to vector<8x8xf32>
    %202 = arith.mulf %197, %201 : vector<8x8xf32>
    %203 = arith.truncf %202 : vector<8x8xf32> to vector<8x8xbf16>
    %cst_39 = arith.constant dense<0.000000e+00> : vector<8x4xf32>
    %204 = tpu.matmul %203, %189, %cst_39 {dimension_numbers = #tpu.dot_dimension_numbers<[1], [0], [0], [1], [0, 0, 1, 1], [], []>} : vector<8x8xbf16>, vector<8x4xbf16>, vector<8x4xf32> -> vector<8x4xf32>
    %205 = tpu.concatenate %57, %78, %99, %120, %141, %162, %183, %204 in 1 : vector<8x4xf32>, vector<8x4xf32>, vector<8x4xf32>, vector<8x4xf32>, vector<8x4xf32>, vector<8x4xf32>, vector<8x4xf32>, vector<8x4xf32> -> vector<8x32xf32>
    %206 = arith.truncf %205 : vector<8x32xf32> to vector<8x32xbf16>
    %c0_40 = arith.constant 0 : index
    %c0_41 = arith.constant 0 : index
    %207 = vector.load %arg5[%c0_40, %c0_41] : memref<32x32xbf16, #tpu.memory_space<vmem>>, vector<32x32xbf16>
    %cst_42 = arith.constant dense<0.000000e+00> : vector<8x32xf32>
    %208 = tpu.matmul %206, %207, %cst_42 {dimension_numbers = #tpu.dot_dimension_numbers<[1], [0], [0], [1], [0, 0, 1, 1], [], []>} : vector<8x32xbf16>, vector<32x32xbf16>, vector<8x32xf32> -> vector<8x32xf32>
    %209 = vector.broadcast %7 : vector<1x32xf32> to vector<8x32xf32>
    %210 = arith.addf %208, %209 : vector<8x32xf32>
    %211 = arith.addf %210, %21 : vector<8x32xf32>
    %cst_43 = arith.constant dense<0.000000e+00> : vector<8xf32>
    %212 = vector.multi_reduction <add>, %211, %cst_43 [1] : vector<8x32xf32> to vector<8xf32>
    %213 = vector.shape_cast %212 : vector<8xf32> to vector<8x1xf32>
    %cst_44 = arith.constant 3.200000e+01 : f32
    %214 = vector.broadcast %cst_44 : f32 to vector<8x1xf32>
    %215 = arith.divf %213, %214 : vector<8x1xf32>
    %216 = vector.broadcast %215 : vector<8x1xf32> to vector<8x32xf32>
    %217 = arith.subf %211, %216 : vector<8x32xf32>
    %218 = arith.mulf %217, %217 : vector<8x32xf32>
    %cst_45 = arith.constant dense<0.000000e+00> : vector<8xf32>
    %219 = vector.multi_reduction <add>, %218, %cst_45 [1] : vector<8x32xf32> to vector<8xf32>
    %220 = vector.shape_cast %219 : vector<8xf32> to vector<8x1xf32>
    %cst_46 = arith.constant 3.200000e+01 : f32
    %221 = vector.broadcast %cst_46 : f32 to vector<8x1xf32>
    %222 = arith.divf %220, %221 : vector<8x1xf32>
    %223 = vector.broadcast %215 : vector<8x1xf32> to vector<8x32xf32>
    %224 = arith.subf %211, %223 : vector<8x32xf32>
    %cst_47 = arith.constant 9.99999974E-6 : f32
    %225 = vector.broadcast %cst_47 : f32 to vector<8x1xf32>
    %226 = arith.addf %222, %225 : vector<8x1xf32>
    %227 = math.rsqrt %226 : vector<8x1xf32>
    %228 = vector.broadcast %227 : vector<8x1xf32> to vector<8x32xf32>
    %229 = arith.mulf %224, %228 : vector<8x32xf32>
    %230 = vector.broadcast %8 : vector<1x32xf32> to vector<8x32xf32>
    %231 = arith.mulf %229, %230 : vector<8x32xf32>
    %232 = vector.broadcast %9 : vector<1x32xf32> to vector<8x32xf32>
    %233 = arith.addf %231, %232 : vector<8x32xf32>
    %234 = arith.truncf %233 : vector<8x32xf32> to vector<8x32xbf16>
    %c0_48 = arith.constant 0 : index
    %c0_49 = arith.constant 0 : index
    %235 = vector.load %arg6[%c0_48, %c0_49] : memref<32x32xbf16, #tpu.memory_space<vmem>>, vector<32x32xbf16>
    %cst_50 = arith.constant dense<0.000000e+00> : vector<8x32xf32>
    %236 = tpu.matmul %234, %235, %cst_50 {dimension_numbers = #tpu.dot_dimension_numbers<[1], [0], [0], [1], [0, 0, 1, 1], [], []>} : vector<8x32xbf16>, vector<32x32xbf16>, vector<8x32xf32> -> vector<8x32xf32>
    %237 = vector.broadcast %10 : vector<1x32xf32> to vector<8x32xf32>
    %238 = arith.addf %236, %237 : vector<8x32xf32>
    %cst_51 = arith.constant 0.000000e+00 : f32
    %239 = vector.broadcast %cst_51 : f32 to vector<8x32xf32>
    %240 = arith.maximumf %238, %239 : vector<8x32xf32>
    %241 = arith.truncf %240 : vector<8x32xf32> to vector<8x32xbf16>
    %c0_52 = arith.constant 0 : index
    %c0_53 = arith.constant 0 : index
    %242 = vector.load %arg7[%c0_52, %c0_53] : memref<32x32xbf16, #tpu.memory_space<vmem>>, vector<32x32xbf16>
    %cst_54 = arith.constant dense<0.000000e+00> : vector<8x32xf32>
    %243 = tpu.matmul %241, %242, %cst_54 {dimension_numbers = #tpu.dot_dimension_numbers<[1], [0], [0], [1], [0, 0, 1, 1], [], []>} : vector<8x32xbf16>, vector<32x32xbf16>, vector<8x32xf32> -> vector<8x32xf32>
    %244 = vector.broadcast %11 : vector<1x32xf32> to vector<8x32xf32>
    %245 = arith.addf %243, %244 : vector<8x32xf32>
    %246 = arith.addf %245, %233 : vector<8x32xf32>
    %cst_55 = arith.constant dense<0.000000e+00> : vector<8xf32>
    %247 = vector.multi_reduction <add>, %246, %cst_55 [1] : vector<8x32xf32> to vector<8xf32>
    %248 = vector.shape_cast %247 : vector<8xf32> to vector<8x1xf32>
    %cst_56 = arith.constant 3.200000e+01 : f32
    %249 = vector.broadcast %cst_56 : f32 to vector<8x1xf32>
    %250 = arith.divf %248, %249 : vector<8x1xf32>
    %251 = vector.broadcast %250 : vector<8x1xf32> to vector<8x32xf32>
    %252 = arith.subf %246, %251 : vector<8x32xf32>
    %253 = arith.mulf %252, %252 : vector<8x32xf32>
    %cst_57 = arith.constant dense<0.000000e+00> : vector<8xf32>
    %254 = vector.multi_reduction <add>, %253, %cst_57 [1] : vector<8x32xf32> to vector<8xf32>
    %255 = vector.shape_cast %254 : vector<8xf32> to vector<8x1xf32>
    %cst_58 = arith.constant 3.200000e+01 : f32
    %256 = vector.broadcast %cst_58 : f32 to vector<8x1xf32>
    %257 = arith.divf %255, %256 : vector<8x1xf32>
    %258 = vector.broadcast %250 : vector<8x1xf32> to vector<8x32xf32>
    %259 = arith.subf %246, %258 : vector<8x32xf32>
    %cst_59 = arith.constant 9.99999974E-6 : f32
    %260 = vector.broadcast %cst_59 : f32 to vector<8x1xf32>
    %261 = arith.addf %257, %260 : vector<8x1xf32>
    %262 = math.rsqrt %261 : vector<8x1xf32>
    %263 = vector.broadcast %262 : vector<8x1xf32> to vector<8x32xf32>
    %264 = arith.mulf %259, %263 : vector<8x32xf32>
    %265 = vector.broadcast %12 : vector<1x32xf32> to vector<8x32xf32>
    %266 = arith.mulf %264, %265 : vector<8x32xf32>
    %267 = vector.broadcast %13 : vector<1x32xf32> to vector<8x32xf32>
    %268 = arith.addf %266, %267 : vector<8x32xf32>
    %269 = tpu.iota {dimensions = array<i32: 0>} : vector<8x1xi32>
    %270 = vector.broadcast %1 : i32 to vector<8x1xi32>
    %271 = arith.cmpi slt, %269, %270 : vector<8x1xi32>
    %272 = arith.extui %271 : vector<8x1xi1> to vector<8x1xi32>
    %273 = arith.sitofp %272 : vector<8x1xi32> to vector<8x1xf32>
    %274 = vector.broadcast %273 : vector<8x1xf32> to vector<8x32xf32>
    %275 = arith.mulf %268, %274 : vector<8x32xf32>
    %276 = arith.truncf %275 : vector<8x32xf32> to vector<8x32xbf16>
    %c0_60 = arith.constant 0 : index
    %c0_61 = arith.constant 0 : index
    %277 = vector.load %arg8[%c0_60, %c0_61] : memref<32x4xbf16, #tpu.memory_space<vmem>>, vector<32x4xbf16>
    %cst_62 = arith.constant dense<0.000000e+00> : vector<8x4xf32>
    %278 = tpu.matmul %276, %277, %cst_62 {dimension_numbers = #tpu.dot_dimension_numbers<[1], [0], [0], [1], [0, 0, 1, 1], [], []>} : vector<8x32xbf16>, vector<32x4xbf16>, vector<8x4xf32> -> vector<8x4xf32>
    %279 = vector.broadcast %14 : vector<1x4xf32> to vector<8x4xf32>
    %280 = arith.addf %278, %279 : vector<8x4xf32>
    %c0_63 = arith.constant 0 : index
    %c0_64 = arith.constant 0 : index
    %281 = vector.load %arg12[%c0_63, %c0_64] : memref<8x4xf32, #tpu.memory_space<vmem>>, vector<8x4xf32>
    tpu.vector_store %arg12[%c0_63, %c0_64], %280 {strides = array<i32>} : memref<8x4xf32, #tpu.memory_space<vmem>>, vector<8x4xf32>,
    %c0_65 = arith.constant 0 : index
    %c0_66 = arith.constant 0 : index
    %c0_67 = arith.constant 0 : index
    %282 = vector.load %arg3[%c0_65, %c0_66, %c0_67] : memref<1x8x4xf32, #tpu.memory_space<vmem>>, vector<1x8x4xf32>
    %283 = vector.shape_cast %282 : vector<1x8x4xf32> to vector<8x4xf32>
    %284 = arith.mulf %280, %283 : vector<8x4xf32>
    %cst_68 = arith.constant dense<0.000000e+00> : vector<4xf32>
    %285 = vector.multi_reduction <add>, %284, %cst_68 [0] : vector<8x4xf32> to vector<4xf32>
    %286 = vector.shape_cast %285 : vector<4xf32> to vector<1x4xf32>
    %cst_69 = arith.constant dense<0.000000e+00> : vector<1xf32>
    %287 = vector.multi_reduction <add>, %286, %cst_69 [1] : vector<1x4xf32> to vector<1xf32>
    %288 = vector.shape_cast %287 : vector<1xf32> to vector<1x1xf32>
    %c0_70 = arith.constant 0 : index
    %c0_71 = arith.constant 0 : index
    %289 = vector.load %arg10[%c0_70, %c0_71] : memref<4x4xf32, #tpu.memory_space<vmem>>, vector<4x4xf32>
    %cst_72 = arith.constant dense<0xFF800000> : vector<4xf32>
    %290 = vector.multi_reduction <maximumf>, %289, %cst_72 [0] : vector<4x4xf32> to vector<4xf32>
    %291 = vector.shape_cast %290 : vector<4xf32> to vector<1x4xf32>
    %292 = vector.broadcast %291 : vector<1x4xf32> to vector<4x4xf32>
    %293 = arith.subf %289, %292 : vector<4x4xf32>
    %294 = math.exp %293 : vector<4x4xf32>
    %295 = vector.extract_strided_slice %280 {offsets = [0, 0], sizes = [1, 4], strides = [1, 1]} : vector<8x4xf32> to vector<1x4xf32>
    %c1_i32 = arith.constant 1 : i32
    %296 = arith.subi %1, %c1_i32 : i32
    %297 = arith.addi %c1_i32, %296 : i32
    %c1_i32_73 = arith.constant 1 : i32
    %298 = scf.for %arg13 = %c1_i32 to %297 step %c1_i32_73 iter_args(%arg14 = %295) -> (vector<1x4xf32>)  : i32 {
      %314 = arith.index_cast %arg13 : i32 to index
      %c0_79 = arith.constant 0 : index
      %315 = vector.load %arg12[%314, %c0_79] : memref<8x4xf32, #tpu.memory_space<vmem>>, vector<1x4xf32>
      %cst_80 = arith.constant dense<0xFF800000> : vector<1xf32>
      %316 = vector.multi_reduction <maximumf>, %arg14, %cst_80 [1] : vector<1x4xf32> to vector<1xf32>
      %317 = vector.shape_cast %316 : vector<1xf32> to vector<1x1xf32>
      %318 = vector.broadcast %317 : vector<1x1xf32> to vector<1x4xf32>
      %319 = arith.subf %arg14, %318 : vector<1x4xf32>
      %320 = math.exp %319 : vector<1x4xf32>
      %cst_81 = arith.constant dense<0.000000e+00> : vector<1x4xf32>
      %321 = tpu.matmul %320, %294, %cst_81 {dimension_numbers = #tpu.dot_dimension_numbers<[1], [0], [0], [1], [0, 0, 1, 1], [], []>} : vector<1x4xf32>, vector<4x4xf32>, vector<1x4xf32> -> vector<1x4xf32>
      %322 = math.log %321 : vector<1x4xf32>
      %323 = vector.broadcast %317 : vector<1x1xf32> to vector<1x4xf32>
      %324 = arith.addf %322, %323 : vector<1x4xf32>
      %325 = arith.addf %324, %291 : vector<1x4xf32>
      %326 = arith.addf %325, %315 : vector<1x4xf32>
      scf.yield %326 : vector<1x4xf32>
    }
    %cst_74 = arith.constant dense<0xFF800000> : vector<1xf32>
    %299 = vector.multi_reduction <maximumf>, %298, %cst_74 [1] : vector<1x4xf32> to vector<1xf32>
    %300 = vector.shape_cast %299 : vector<1xf32> to vector<1x1xf32>
    %301 = vector.broadcast %300 : vector<1x1xf32> to vector<1x4xf32>
    %302 = arith.subf %298, %301 : vector<1x4xf32>
    %303 = math.exp %302 : vector<1x4xf32>
    %cst_75 = arith.constant dense<0.000000e+00> : vector<1xf32>
    %304 = vector.multi_reduction <add>, %303, %cst_75 [1] : vector<1x4xf32> to vector<1xf32>
    %305 = vector.shape_cast %304 : vector<1xf32> to vector<1x1xf32>
    %306 = math.log %305 : vector<1x1xf32>
    %307 = arith.addf %306, %300 : vector<1x1xf32>
    %308 = arith.subf %307, %288 : vector<1x1xf32>
    %309 = vector.shape_cast %308 : vector<1x1xf32> to vector<1x1xf32>
    %310 = vector.broadcast %309 : vector<1x1xf32> to vector<8x128xf32>
    %c0_76 = arith.constant 0 : index
    %c0_77 = arith.constant 0 : index
    %c0_78 = arith.constant 0 : index
    %311 = vector.load %arg11[%c0_76, %c0_77, %c0_78] : memref<1x8x128xf32, #tpu.memory_space<vmem>>, vector<1x8x128xf32>
    %312 = vector.shape_cast %311 : vector<1x8x128xf32> to vector<8x128xf32>
    %313 = vector.shape_cast %310 : vector<8x128xf32> to vector<1x8x128xf32>
    tpu.vector_store %arg11[%c0_76, %c0_77, %c0_78], %313 {strides = array<i32>} : memref<1x8x128xf32, #tpu.memory_space<vmem>>, vector<1x8x128xf32>,
    return
  }
  func.func @transform_0(%arg0: i32, %arg1: memref<2xi32, #tpu.memory_space<smem>>) -> (i32, i32, i32) {
    %c0_i32 = arith.constant 0 : i32
    %c0_i32_0 = arith.constant 0 : i32
    %c0_i32_1 = arith.constant 0 : i32
    return %arg0, %c0_i32, %c0_i32_0 : i32, i32, i32
  }
  func.func @transform_1(%arg0: i32, %arg1: memref<2xi32, #tpu.memory_space<smem>>) -> (i32, i32, i32) {
    %c0_i32 = arith.constant 0 : i32
    %c0_i32_0 = arith.constant 0 : i32
    %c0_i32_1 = arith.constant 0 : i32
    return %arg0, %c0_i32, %c0_i32_0 : i32, i32, i32
  }
  func.func @transform_2(%arg0: i32, %arg1: memref<2xi32, #tpu.memory_space<smem>>) -> (i32, i32) {
    %c0_i32 = arith.constant 0 : i32
    %c0_i32_0 = arith.constant 0 : i32
    %c0_i32_1 = arith.constant 0 : i32
    return %c0_i32, %c0_i32_0 : i32, i32
  }
  func.func @transform_3(%arg0: i32, %arg1: memref<2xi32, #tpu.memory_space<smem>>) -> (i32, i32) {
    %c0_i32 = arith.constant 0 : i32
    %c0_i32_0 = arith.constant 0 : i32
    %c0_i32_1 = arith.constant 0 : i32
    return %c0_i32, %c0_i32_0 : i32, i32
  }
  func.func @transform_4(%arg0: i32, %arg1: memref<2xi32, #tpu.memory_space<smem>>) -> (i32, i32) {
    %c0_i32 = arith.constant 0 : i32
    %c0_i32_0 = arith.constant 0 : i32
    %c0_i32_1 = arith.constant 0 : i32
    return %c0_i32, %c0_i32_0 : i32, i32
  }
  func.func @transform_5(%arg0: i32, %arg1: memref<2xi32, #tpu.memory_space<smem>>) -> (i32, i32) {
    %c0_i32 = arith.constant 0 : i32
    %c0_i32_0 = arith.constant 0 : i32
    %c0_i32_1 = arith.constant 0 : i32
    return %c0_i32, %c0_i32_0 : i32, i32
  }
  func.func @transform_6(%arg0: i32, %arg1: memref<2xi32, #tpu.memory_space<smem>>) -> (i32, i32) {
    %c0_i32 = arith.constant 0 : i32
    %c0_i32_0 = arith.constant 0 : i32
    %c0_i32_1 = arith.constant 0 : i32
    return %c0_i32, %c0_i32_0 : i32, i32
  }
  func.func @transform_7(%arg0: i32, %arg1: memref<2xi32, #tpu.memory_space<smem>>) -> (i32, i32) {
    %c0_i32 = arith.constant 0 : i32
    %c0_i32_0 = arith.constant 0 : i32
    %c0_i32_1 = arith.constant 0 : i32
    return %c0_i32, %c0_i32_0 : i32, i32
  }
  func.func @transform_8(%arg0: i32, %arg1: memref<2xi32, #tpu.memory_space<smem>>) -> (i32, i32) {
    %c0_i32 = arith.constant 0 : i32
    %c0_i32_0 = arith.constant 0 : i32
    %c0_i32_1 = arith.constant 0 : i32
    return %c0_i32, %c0_i32_0 : i32, i32
  }
  func.func @transform_9(%arg0: i32, %arg1: memref<2xi32, #tpu.memory_space<smem>>) -> (i32, i32, i32) {
    %c0_i32 = arith.constant 0 : i32
    %c0_i32_0 = arith.constant 0 : i32
    %c0_i32_1 = arith.constant 0 : i32
    return %arg0, %c0_i32, %c0_i32_0 : i32, i32, i32
  }
}

</mosaic_0001>

<bundles_post_ra>
// kernel: transformer_cws_forward.1
= control target key start
LH: loop header
LB: loop body
LE: loop exit
PB: predicated region body
PF: predicated region fallthrough
CT: control target
= control target key end

     0   :  { %s2737_s0 = inlined_call_operand.vmem [shape: s32[2], index: 0, kind: input, shape index: {}]   ;;  %s2738_s1 = inlined_call_operand.vmem [shape: bf16[2,8,32], index: 1, kind: input, shape index: {}]   ;;  %s2739_s2 = inlined_call_operand.vmem [shape: f32[2,8,4], index: 2, kind: input, shape index: {}]   ;;  %s2740_s3 = inlined_call_operand.vmem [shape: bf16[32,128], index: 3, kind: input, shape index: {}]   ;;  %s2741_s4 = inlined_call_operand.vmem [shape: bf16[32,32], index: 4, kind: input, shape index: {}]   ;;  %s2742_s5 = inlined_call_operand.vmem [shape: bf16[32,32], index: 5, kind: input, shape index: {}]   ;;  %s2743_s6 = inlined_call_operand.vmem [shape: bf16[32,32], index: 6, kind: input, shape index: {}]   ;;  %s2744_s7 = inlined_call_operand.vmem [shape: bf16[32,4], index: 7, kind: input, shape index: {}]   ;;  %s2745_s8 = inlined_call_operand.vmem [shape: f32[12,32], index: 8, kind: input, shape index: {}]   ;;  %s2746_s9 = inlined_call_operand.vmem [shape: f32[4,4], index: 9, kind: input, shape index: {}]   ;;  %s2747_s10 = inlined_call_operand.vmem [shape: f32[2,8,128], index: 10, kind: output, shape index: {}]  }
   0x1   :  { %s15_s15 = sshll.u32 %s2737_s0, 4  ;;  %s16_s15 = int_to_ptr.vmem [resolvable:$true] %s15_s15 }
   0x2   :  { %s2263_s16 = scalar_lea.vmem %s16_s15, 16  ;;  %p2268_p1 = scmp.lt.s32.totalorder %s16_s15, %s16_s15 }
   0x3   :  { %p2264_p0 = scmp.ne.s32.totalorder %s16_s15, %s2263_s16  ;;  %p2269_p2 = scmp.lt.s32.totalorder %s2263_s16, %s2263_s16 }
   0x5   :  { %p2270_p3 = por %p2269_p2, %p2268_p1 }
   0x7   :  { %p2271_p4 = pnand %p2270_p3, %p2264_p0 }
   0x9   :  { %2274 = shalt.err (!%p2271_p4)  }
   0xa   :  { %s2309_s17 = smov [#allocation4]  }
   0xb   :  { %18 = dma.vmem_to_smem %s16_s15, 16, %s2309_s17, [#allocation3] }
   0xc   :  { %2291 = dma.done.wait [#allocation3], 16 }
   0xd   :  { %2292 = vsyncadd [#allocation3], 4294967280 }
   0xe   :  { %20 = sfence }
   0xf   :  { %s2397_s18 = smov 0  }
  0x10 LB: > { %s2403_s0 = sadd.s32 4294967295, %s2295_s18   ;;  %p1914_p5 = scmp.ge.s32.totalorder %s2295_s18, 1  ;;  %s2295_s18 = sphi %s2397_s18, %s26_s18  }
  0x11   : > { %p302_p6 = scmp.lt.s32.totalorder %s2295_s18, 3 }
  0x13   : > { %p303_p7 = pnand %p1914_p5, %p302_p6 }
  0x14   : > { %v2207_v0 = vld [vmem:[%s2740_s3] sm:$0xff] (!%p303_p7)   ;;  %v417_v1 = vlaneseq (!%p303_p7)  ;;  %v2310_v2 = vmov (!%p303_p7), 0.0   ;;  %v2208_v3 = vld [vmem:[%s2740_s3 + $0x8] sm:$0xff] (!%p303_p7)   ;;  %vm2311_vm0 = vmmov (!%p303_p7), 0   ;;  %p340_p8 = scmp.lt.s32.totalorder (!%p303_p7), %s2403_s0, 1  ;;  %vm373_vm1 = vcmask (!%p303_p7), 261120  }
  0x15   : > { %306 = sbr.rel (%p303_p7) target bundleno = 3838 (0xefe), region = 56  ;;  %2004 = vmatprep.subr.bf16.mxu0 (!%p303_p7), %v2310_v2  ;;  %2012 = vmatprep.subr.bf16.mxu1 (!%p303_p7), %v2310_v2  ;;  %v2425_v5 = vld [vmem:[%s2745_s8] sm:$0xff] (!%p303_p7)  ;;  %s2312_s30 = smov (!%p303_p7), 64   ;;  %vm463_vm2 = vcmask (!%p303_p7), 31744   ;;  %v2329_v47 = vmov (!%p303_p7), -1e+30  }
  0x16   : > { %2005 = vmatpush3.bf16.msra.mxu0 (!%p303_p7), %v2207_v0  ;;  %2008 = vmatprep.mubr.msk.bf16.mxu0 (!%p303_p7), %vm2311_vm0, %v2310_v2  ;;  %v2419_v4 = vshrl.u32 (!%p303_p7), %v417_v1, 7  ;;  %s2313_s11 = smov (!%p303_p7), 32   ;;  %s2314_s12 = smov (!%p303_p7), 60   ;;  %v450_v45 = vand.u32 (!%p303_p7), 127, %v417_v1  ;;  %vm510_vm4 = vcmask (!%p303_p7), 64512   ;;  %vm529_vm5 = vcmask (!%p303_p7), 1043456  }
  0x17   : > { %2006 = vmatprep.subr.bf16.mxu0 (!%p303_p7), %v2310_v2  ;;  %2014 = vmatprep.mubr.msk.bf16.mxu1 (!%p303_p7), %vm2311_vm0, %v2310_v2  ;;  %s2315_s13 = smov (!%p303_p7), 56   ;;  %s2316_s14 = smov (!%p303_p7), 96   ;;  %vm1373_vm6 = vcmask (!%p303_p7), 97280   ;;  %vm1375_vm7 = vcmask (!%p303_p7), 130048   ;;  %vm1377_vm8 = vcmask (!%p303_p7), 162816   ;;  %vm1379_vm9 = vcmask (!%p303_p7), 195584  }
  0x18   : > { %v433_v6 = vsub.s32 (!%p303_p7), 2, %v2419_v4  ;;  %v424_v7 = vsub.s32 (!%p303_p7), 1, %v2419_v4  ;;  %s2317_s15 = smov (!%p303_p7), 52   ;;  %s2318_s16 = smov (!%p303_p7), 92   ;;  %vm1381_vm10 = vcmask (!%p303_p7), 228352   ;;  %vm1709_vm12 = vcmask (!%p303_p7), 27648  }
  0x19   : > { %s2319_s17 = smov (!%p303_p7), 48   ;;  %s2320_s19 = smov (!%p303_p7), 88  }
  0x1a   : > { %2007 = vmatpush3.bf16.msra.mxu0 (!%p303_p7), %v2208_v3  ;;  %v434_v8 = vrot.slane (!%p303_p7), %v2425_v5, %v433_v6  ;;  %v425_v10 = vrot.slane (!%p303_p7), %v2425_v5, %v424_v7  ;;  %s2321_s20 = smov (!%p303_p7), 44   ;;  %s2322_s21 = smov (!%p303_p7), 84  }
  0x1b   : > { %2018 = vmatprep.subr.bf16.mxu0 (!%p303_p7), %v2310_v2  ;;  %s2323_s22 = smov (!%p303_p7), 40   ;;  %s2324_s23 = smov (!%p303_p7), 80  }
  0x1c   : > { %s2430_s25 = scalar_select %p340_p8, %s2403_s0, 1  ;;  %436 = vrot.lane.b32.xlu0 %v434_v8, %s2312_s30 }
  0x1d   : > { %s2325_s24 = smov 36   ;;  %s2327_s27 = smov 72  }
  0x1e   : > { %s1915_s26 = sshll.u32 %s2430_s25, 2  ;;  %s2328_s28 = smov 68  }
  0x1f   : > { %s343_s29 = scalar_lea.vmem %s2738_s1, %s1915_s26  ;;  %s2326_s26 = smov 76  }
  0x20   : > { %v356_v9 = vld [vmem:[%s343_s29] sm:$0xf]  ;;  %427 = vrot.lane.b32.xlu0 %v425_v10, %s2313_s11  ;;  %s2495_s29 = sld [smem:[#allocation4 + %s2403_s0]]  ;;  %s2330_s0 = smov 24  }
  0x21   : > { %2009 = vmatmul.mubr.msk.bf16.vlgmr.msra.gmra.mrb[0].mxu0 %vm373_vm1, %v356_v9 }
  0x22   : > { %2020 = vmatprep.mubr.msk.bf16.mxu0 %vm2311_vm0, %v2310_v2 }
  0x26   : > { %v451_v46 = vstv %s2495_s29  ;;  %p1950_p9 = scmp.le.s32.totalorder %s2495_s29, 1 }
  0x27   : > { %vm452_vm3 = vcmp.lt.s32.totalorder %v450_v45, %v451_v46  ;;  %vm1627_vm11 = vcmp.lt.s32.totalorder %v2419_v4, %v451_v46 }
  0x28   : > { %v453_v48 = vsel %vm452_vm3, 0.0, %v2329_v47 }
  0x8e   : > { %v437_v11 = vpop.permute.xlu0 %436 }
  0x92   : > { %v428_v12 = vpop.permute.xlu0 %427 }
  0xf4   : > { %v2449_v13 = vpop.f32.mrb[0].mxu0 }
  0xf5   : > { %v439_v14 = vadd.f32 %v437_v11, %v2449_v13  ;;  %v2010_v15 = vpop.f32.mrb[1].mxu0  ;;  %v430_v17 = vadd.f32 %v428_v12, %v2449_v13 }
  0xf6   : > { %v414_v16 = vpop.f32.mrb[2].mxu0 }
  0xf7   : > { %v455_v18 = vpack.c.bf16 %v439_v14, %v439_v14  ;;  %v2011_v19 = vpop.f32.mrb[3].mxu0  ;;  %v454_v20 = vpack.c.bf16 %v430_v17, %v430_v17 }
  0xf9   : > { %575 = vrot.lane.b32.xlu0 %v455_v18, %s2314_s12  ;;  %461 = vrot.lane.b32.xlu1 %v455_v18, %s2312_s30  ;;  %s2331_s30 = smov 16   ;;  %s2332_s12 = smov 28  }
  0xfd   : > { %685 = vrot.lane.b32.xlu0 %v455_v18, %s2315_s13  ;;  %458 = vrot.lane.b32.xlu1 %v454_v20, %s2316_s14  ;;  %s2334_s13 = smov 8  }
 0x101   : > { %795 = vrot.lane.b32.xlu0 %v455_v18, %s2317_s15  ;;  %573 = vrot.lane.b32.xlu1 %v454_v20, %s2318_s16  ;;  %s2336_s15 = smov 4   ;;  %s1916_s16 = sshll.u32 %s2430_s25, 3 }
 0x105   : > { %905 = vrot.lane.b32.xlu0 %v455_v18, %s2319_s17  ;;  %683 = vrot.lane.b32.xlu1 %v454_v20, %s2320_s19 }
 0x109   : > { %1015 = vrot.lane.b32.xlu0 %v455_v18, %s2321_s20  ;;  %793 = vrot.lane.b32.xlu1 %v454_v20, %s2322_s21  ;;  %s2701_s20 = scalar_lea.vmem %s2747_s10, %s1916_s16 }
 0x10d   : > { %1125 = vrot.lane.b32.xlu0 %v455_v18, %s2323_s22  ;;  %903 = vrot.lane.b32.xlu1 %v454_v20, %s2324_s23  ;;  %s347_s22 = scalar_lea.vmem %s2739_s2, %s1916_s16 }
 0x111   : > { %1235 = vrot.lane.b32.xlu0 %v455_v18, %s2325_s24  ;;  %1013 = vrot.lane.b32.xlu1 %v454_v20, %s2326_s26  ;;  %s2724_s26 = smov (!%p1950_p9), 1  }
 0x115   : > { %1123 = vrot.lane.b32.xlu1 %v454_v20, %s2327_s27 }
 0x119   : > { %1233 = vrot.lane.b32.xlu1 %v454_v20, %s2328_s28 }
 0x16b   : > { %v462_v21 = vpop.permute.xlu1 %461  ;;  %v576_v23 = vpop.permute.xlu0 %575 }
 0x16c   : > { %v468_v22 = vsel %vm463_vm2, %v462_v21, 0  ;;  %v581_v25 = vsel %vm463_vm2, %v576_v23, 0 }
 0x16d   : > { %2013 = vmatpush3.bf16.xpose.msra.mxu1 %v468_v22 }
 0x16e   : > { %2024 = vmatprep.subr.bf16.mxu1 %v2310_v2 }
 0x16f   : > { %v459_v24 = vpop.permute.xlu1 %458  ;;  %v686_v26 = vpop.permute.xlu0 %685 }
 0x170   : > { %v691_v28 = vsel %vm463_vm2, %v686_v26, 0 }
 0x173   : > { %v574_v27 = vpop.permute.xlu1 %573  ;;  %v796_v29 = vpop.permute.xlu0 %795 }
 0x174   : > { %2015 = vmatmul.mubr.msk.bf16.vlgmr.msra.gmra.mrb[0].mxu1 %vm463_vm2, %v459_v24  ;;  %v801_v31 = vsel %vm463_vm2, %v796_v29, 0 }
 0x175   : > { %2025 = vmatpush3.bf16.xpose.msra.mxu1 %v581_v25  ;;  %2026 = vmatprep.mubr.msk.bf16.mxu1 %vm2311_vm0, %v2310_v2 }
 0x176   : > { %2036 = vmatprep.subr.bf16.mxu1 %v2310_v2 }
 0x177   : > { %v684_v30 = vpop.permute.xlu1 %683  ;;  %v906_v32 = vpop.permute.xlu0 %905 }
 0x178   : > { %v911_v34 = vsel %vm463_vm2, %v906_v32, 0 }
 0x17b   : > { %v794_v33 = vpop.permute.xlu1 %793  ;;  %v1016_v35 = vpop.permute.xlu0 %1015 }
 0x17c   : > { %2027 = vmatmul.mubr.msk.bf16.vlgmr.msra.gmra.mrb[4].mxu1 %vm463_vm2, %v574_v27  ;;  %v1021_v37 = vsel %vm463_vm2, %v1016_v35, 0 }
 0x17d   : > { %2037 = vmatpush3.bf16.xpose.msra.mxu1 %v691_v28  ;;  %2038 = vmatprep.mubr.msk.bf16.mxu1 %vm2311_vm0, %v2310_v2 }
 0x17e   : > { %2048 = vmatprep.subr.bf16.mxu1 %v2310_v2 }
 0x17f   : > { %v904_v36 = vpop.permute.xlu1 %903  ;;  %v1126_v38 = vpop.permute.xlu0 %1125 }
 0x180   : > { %v1131_v40 = vsel %vm463_vm2, %v1126_v38, 0 }
 0x183   : > { %v1014_v39 = vpop.permute.xlu1 %1013  ;;  %v1236_v41 = vpop.permute.xlu0 %1235 }
 0x184   : > { %2039 = vmatmul.mubr.msk.bf16.vlgmr.msra.gmra.mrb[8].mxu1 %vm463_vm2, %v684_v30  ;;  %v1241_v43 = vsel %vm463_vm2, %v1236_v41, 0 }
 0x185   : > { %2049 = vmatpush3.bf16.xpose.msra.mxu1 %v801_v31  ;;  %2050 = vmatprep.mubr.msk.bf16.mxu1 %vm2311_vm0, %v2310_v2 }
 0x186   : > { %2060 = vmatprep.subr.bf16.mxu1 %v2310_v2 }
 0x187   : > { %v1124_v42 = vpop.permute.xlu1 %1123 }
 0x18b   : > { %v1234_v44 = vpop.permute.xlu1 %1233 }
 0x18c   : > { %2051 = vmatmul.mubr.msk.bf16.vlgmr.msra.gmra.mrb[12].mxu1 %vm463_vm2, %v794_v33 }
 0x18d   : > { %2061 = vmatpush3.bf16.xpose.msra.mxu1 %v911_v34  ;;  %2062 = vmatprep.mubr.msk.bf16.mxu1 %vm2311_vm0, %v2310_v2 }
 0x18e   : > { %2072 = vmatprep.subr.bf16.mxu1 %v2310_v2 }
 0x194   : > { %2063 = vmatmul.mubr.msk.bf16.vlgmr.msra.gmra.mrb[16].mxu1 %vm463_vm2, %v904_v36  ;;  %v442_v36 = vsub.s32 3, %v2419_v4 }
 0x195   : > { %2073 = vmatpush3.bf16.xpose.msra.mxu1 %v1021_v37  ;;  %2074 = vmatprep.mubr.msk.bf16.mxu1 %vm2311_vm0, %v2310_v2 }
 0x196   : > { %2084 = vmatprep.subr.bf16.mxu1 %v2310_v2  ;;  %v443_v38 = vrot.slane %v2425_v5, %v442_v36 }
 0x19c   : > { %2075 = vmatmul.mubr.msk.bf16.vlgmr.msra.gmra.mrb[20].mxu1 %vm463_vm2, %v1014_v39 }
 0x19d   : > { %2085 = vmatpush3.bf16.xpose.msra.mxu1 %v1131_v40  ;;  %2086 = vmatprep.mubr.msk.bf16.mxu1 %vm2311_vm0, %v2310_v2 }
 0x19e   : > { %2096 = vmatprep.subr.bf16.mxu1 %v2310_v2 }
 0x1a4   : > { %2087 = vmatmul.mubr.msk.bf16.vlgmr.msra.gmra.mrb[24].mxu1 %vm463_vm2, %v1124_v42 }
 0x1a5   : > { %2097 = vmatpush3.bf16.xpose.msra.mxu1 %v1241_v43  ;;  %2098 = vmatprep.mubr.msk.bf16.mxu1 %vm2311_vm0, %v2310_v2 }
 0x1a6   : > { %2108 = vmatprep.subr.bf16.mxu1 %v2310_v2 }
 0x1ac   : > { %2099 = vmatmul.mubr.msk.bf16.vlgmr.msra.gmra.mrb[28].mxu1 %vm463_vm2, %v1234_v44 }
 0x1ad   : > { %2112 = vmatprep.mubr.msk.bf16.mxu1 %vm2311_vm0, %v2310_v2 }
 0x247   : > { %v504_v49 = vpop.f32.mrb[0].mxu1 }
 0x248   : > { %v2501_v50 = vadd.f32 %v504_v49, %v453_v48  ;;  %v2016_v51 = vpop.f32.mrb[1].mxu1 }
 0x249   : > { %v507_v52 = vpop.f32.mrb[2].mxu1 }
 0x24a   : > { %v2017_v53 = vpop.f32.mrb[3].mxu1  ;;  %v511_v54 = vsel %vm510_vm4, %v2501_v50, -inf }
 0x24b   : > { %512 = vmax.xlane.f32.xlu0 %v511_v54 }
 0x24f   : > { %v617_v55 = vpop.f32.mrb[4].mxu1 }
 0x250   : > { %v2505_v56 = vadd.f32 %v617_v55, %v453_v48  ;;  %v2028_v57 = vpop.f32.mrb[5].mxu1 }
 0x251   : > { %v620_v58 = vpop.f32.mrb[6].mxu1 }
 0x252   : > { %v2029_v59 = vpop.f32.mrb[7].mxu1  ;;  %v623_v60 = vsel %vm510_vm4, %v2505_v56, -inf }
 0x253   : > { %624 = vmax.xlane.f32.xlu1 %v623_v60 }
 0x257   : > { %v727_v61 = vpop.f32.mrb[8].mxu1 }
 0x258   : > { %v2509_v62 = vadd.f32 %v727_v61, %v453_v48  ;;  %v2040_v63 = vpop.f32.mrb[9].mxu1 }
 0x259   : > { %v730_v0 = vpop.f32.mrb[10].mxu1 }
 0x25a   : > { %v2041_v1 = vpop.f32.mrb[11].mxu1  ;;  %v733_v3 = vsel %vm510_vm4, %v2509_v62, -inf }
 0x25b   : > { %734 = vmax.xlane.f32.xlu0 %v733_v3 }
 0x25f   : > { %v837_v8 = vpop.f32.mrb[12].mxu1 }
 0x260   : > { %v2513_v9 = vadd.f32 %v837_v8, %v453_v48  ;;  %v2052_v10 = vpop.f32.mrb[13].mxu1 }
 0x261   : > { %v840_v11 = vpop.f32.mrb[14].mxu1 }
 0x262   : > { %v2053_v12 = vpop.f32.mrb[15].mxu1  ;;  %v843_v14 = vsel %vm510_vm4, %v2513_v9, -inf }
 0x263   : > { %844 = vmax.xlane.f32.xlu0 %v843_v14 }
 0x267   : > { %v947_v15 = vpop.f32.mrb[16].mxu1 }
 0x268   : > { %v948_v16 = vadd.f32 %v947_v15, %v453_v48  ;;  %v2064_v17 = vpop.f32.mrb[17].mxu1 }
 0x269   : > { %v950_v18 = vpop.f32.mrb[18].mxu1 }
 0x26a   : > { %v2065_v19 = vpop.f32.mrb[19].mxu1  ;;  %v953_v20 = vsel %vm510_vm4, %v948_v16, -inf }
 0x26b   : > { %954 = vmax.xlane.f32.xlu1 %v953_v20 }
 0x26f   : > { %v1057_v21 = vpop.f32.mrb[20].mxu1 }
 0x270   : > { %v2518_v22 = vadd.f32 %v1057_v21, %v453_v48  ;;  %v2076_v23 = vpop.f32.mrb[21].mxu1 }
 0x271   : > { %v1060_v24 = vpop.f32.mrb[22].mxu1 }
 0x272   : > { %v2077_v25 = vpop.f32.mrb[23].mxu1  ;;  %v1063_v26 = vsel %vm510_vm4, %v2518_v22, -inf }
 0x273   : > { %1064 = vmax.xlane.f32.xlu0 %v1063_v26 }
 0x277   : > { %v1167_v27 = vpop.f32.mrb[24].mxu1 }
 0x278   : > { %v2522_v28 = vadd.f32 %v1167_v27, %v453_v48  ;;  %v2088_v29 = vpop.f32.mrb[25].mxu1 }
 0x279   : > { %v1170_v30 = vpop.f32.mrb[26].mxu1 }
 0x27a   : > { %v2089_v31 = vpop.f32.mrb[27].mxu1 }
 0x27f   : > { %v1277_v32 = vpop.f32.mrb[28].mxu1 }
 0x280   : > { %v2524_v33 = vadd.f32 %v1277_v32, %v453_v48  ;;  %v2100_v34 = vpop.f32.mrb[29].mxu1 }
 0x281   : > { %v1280_v35 = vpop.f32.mrb[30].mxu1 }
 0x282   : > { %v2101_v37 = vpop.f32.mrb[31].mxu1  ;;  %v1283_v63 = vsel %vm510_vm4, %v2524_v33, -inf }
 0x289   : > { %445 = vrot.lane.b32.xlu0 %v443_v38, %s2316_s14  ;;  %s2335_s14 = smov 12  }
 0x2d8   : > { %v513_v39 = vpop.xlane.xlu0 %512 }
 0x2d9   : > { %v514_v52 = vsub.f32 %v2501_v50, %v513_v39  ;;  %v1173_v50 = vsel %vm510_vm4, %v2522_v28, -inf }
 0x2db   : > { %v515_v53 = vmul.f32 1.442695, %v514_v52 }
 0x2e0   : > { %v625_v47 = vpop.xlane.xlu1 %624 }
 0x2e1   : > { %v626_v54 = vsub.f32 %v2505_v56, %v625_v47 }
 0x2e3   : > { %v627_v57 = vmul.f32 1.442695, %v626_v54 }
 0x2e8   : > { %v735_v40 = vpop.xlane.xlu0 %734 }
 0x2e9   : > { %v736_v58 = vsub.f32 %v2509_v62, %v735_v40 }
 0x2eb   : > { %v737_v60 = vmul.f32 1.442695, %v736_v58 }
 0x2f0   : > { %v845_v41 = vpop.xlane.xlu0 %844 }
 0x2f1   : > { %v846_v61 = vsub.f32 %v2513_v9, %v845_v41 }
 0x2f3   : > { %v847_v56 = vmul.f32 1.442695, %v846_v61 }
 0x2f8   : > { %v955_v48 = vpop.xlane.xlu1 %954 }
 0x2f9   : > { %v956_v49 = vsub.f32 %v948_v16, %v955_v48 }
 0x2fb   : > { %v957_v51 = vmul.f32 1.442695, %v956_v49 }
 0x2fd   : > { %2217 = vpow2.f32 %v957_v51 }
 0x2fe   : > { %2219 = vpow2.f32 %v515_v53 }
 0x2ff   : > { %2221 = vpow2.f32 %v627_v57 }
 0x300   : > { %v1065_v42 = vpop.xlane.xlu0 %1064  ;;  %2223 = vpow2.f32 %v737_v60 }
 0x301   : > { %2225 = vpow2.f32 %v847_v56  ;;  %v1066_v12 = vsub.f32 %v2518_v22, %v1065_v42 }
 0x303   : > { %v1067_v14 = vmul.f32 1.442695, %v1066_v12 }
 0x304   : > { %v446_v43 = vpop.permute.xlu0 %445 }
 0x305   : > { %v448_v44 = vadd.f32 %v446_v43, %v2449_v13  ;;  %2227 = vpow2.f32 %v1067_v14 }
 0x307   : > { %v2532_v45 = vpack.c.bf16 %v448_v44, %v448_v44  ;;  %v2544_v55 = vpop.eup %2217 }
 0x308   : > { %v959_v59 = vsel %vm510_vm4, %v2544_v55, 0.0  ;;  %v2220_v0 = vpop.eup %2219 }
 0x309   : > { %745 = vrot.lane.b32.xlu0 %v2532_v45, %s2330_s0  ;;  %524 = vrot.lane.b32.xlu1 %v2532_v45, %s2313_s11  ;;  %v517_v62 = vsel %vm510_vm4, %v2220_v0, 0.0  ;;  %v2222_v1 = vpop.eup %2221  ;;  %s2333_s11 = smov 20  }
 0x30a   : > { %v629_v3 = vsel %vm510_vm4, %v2222_v1, 0.0  ;;  %v2224_v8 = vpop.eup %2223 }
 0x30b   : > { %v739_v9 = vsel %vm510_vm4, %v2224_v8, 0.0  ;;  %v2557_v10 = vpop.eup %2225 }
 0x30c   : > { %v849_v11 = vsel %vm510_vm4, %v2557_v10, 0.0 }
 0x30d   : > { %965 = vrot.lane.b32.xlu0 %v2532_v45, %s2331_s30  ;;  %635 = vrot.lane.b32.xlu1 %v2532_v45, %s2332_s12 }
 0x30f   : > { %v2564_v15 = vpop.eup %2227 }
 0x310   : > { %v1069_v16 = vsel %vm510_vm4, %v2564_v15, 0.0 }
 0x32c   : > { %960 = vadd.xlane.f32.xlu0 %v959_v59 }
 0x331   : > { %1174 = vmax.xlane.f32.xlu1 %v1173_v50 }
 0x335   : > { %1284 = vmax.xlane.f32.xlu1 %v1283_v63 }
 0x339   : > { %518 = vadd.xlane.f32.xlu1 %v517_v62 }
 0x33d   : > { %630 = vadd.xlane.f32.xlu1 %v629_v3 }
 0x341   : > { %740 = vadd.xlane.f32.xlu1 %v739_v9 }
 0x345   : > { %850 = vadd.xlane.f32.xlu1 %v849_v11 }
 0x356   : > { %855 = vrot.lane.b32.xlu1 %v2532_v45, %s2333_s11 }
 0x37a   : > { %1070 = vadd.xlane.f32.xlu1 %v1069_v16 }
 0x37b   : > { %v525_v17 = vpop.permute.xlu1 %524  ;;  %v746_v38 = vpop.permute.xlu0 %745 }
 0x37c   : > { %v531_v18 = vsel %vm529_vm5, %v525_v17, 0  ;;  %v751_v47 = vsel %vm529_vm5, %v746_v38, 0 }
 0x37d   : > { %2019 = vmatpush3.bf16.msra.mxu0 %v531_v18 }
 0x37e   : > { %2030 = vmatprep.subr.bf16.mxu0 %v2310_v2 }
 0x37f   : > { %v636_v19 = vpop.permute.xlu1 %635  ;;  %v966_v42 = vpop.permute.xlu0 %965 }
 0x380   : > { %v641_v39 = vsel %vm529_vm5, %v636_v19, 0  ;;  %v971_v60 = vsel %vm529_vm5, %v966_v42, 0 }
 0x3b9   : > { %v961_v48 = vpop.xlane.xlu0 %960 }
 0x3be   : > { %v1175_v20 = vpop.xlane.xlu1 %1174 }
 0x3bf   : > { %v1176_v21 = vsub.f32 %v2522_v28, %v1175_v20 }
 0x3c1   : > { %v1177_v22 = vmul.f32 1.442695, %v1176_v21 }
 0x3c2   : > { %v1285_v23 = vpop.xlane.xlu1 %1284 }
 0x3c3   : > { %2229 = vpow2.f32 %v1177_v22  ;;  %v1286_v24 = vsub.f32 %v2524_v33, %v1285_v23 }
 0x3c5   : > { %v1287_v25 = vmul.f32 1.442695, %v1286_v24 }
 0x3c6   : > { %v519_v26 = vpop.xlane.xlu1 %518 }
 0x3c7   : > { %2231 = vpow2.f32 %v1287_v25 }
 0x3c8   : > { %2233 = vrcp.f32 %v519_v26 }
 0x3ca   : > { %v631_v27 = vpop.xlane.xlu1 %630 }
 0x3cb   : > { %2235 = vrcp.f32 %v631_v27 }
 0x3cd   : > { %v2572_v29 = vpop.eup %2229 }
 0x3ce   : > { %v1179_v30 = vsel %vm510_vm4, %v2572_v29, 0.0  ;;  %v741_v28 = vpop.xlane.xlu1 %740 }
 0x3cf   : > { %1180 = vadd.xlane.f32.xlu0 %v1179_v30  ;;  %2237 = vrcp.f32 %v741_v28 }
 0x3d1   : > { %v2576_v31 = vpop.eup %2231 }
 0x3d2   : > { %v2234_v32 = vpop.eup %2233  ;;  %v1289_v34 = vsel %vm510_vm4, %v2576_v31, 0.0  ;;  %v851_v41 = vpop.xlane.xlu1 %850 }
 0x3d3   : > { %v521_v33 = vmul.f32 %v2234_v32, %v2220_v0  ;;  %1290 = vadd.xlane.f32.xlu1 %v1289_v34  ;;  %2239 = vrcp.f32 %v851_v41 }
 0x3d4   : > { %2241 = vrcp.f32 %v961_v48 }
 0x3d5   : > { %v522_v35 = vpack.c.bf16 %v521_v33, %v521_v33  ;;  %v2236_v37 = vpop.eup %2235 }
 0x3d6   : > { %v633_v40 = vmul.f32 %v2236_v37, %v2222_v1  ;;  %v856_v51 = vpop.permute.xlu1 %855 }
 0x3d7   : > { %2021 = vmatmul.mubr.msk.bf16.vlgmr.msra.gmra.mrb[4].mxu0 %vm510_vm4, %v522_v35  ;;  %v861_v54 = vsel %vm529_vm5, %v856_v51, 0 }
 0x3d8   : > { %2031 = vmatpush3.bf16.msra.mxu0 %v641_v39  ;;  %2032 = vmatprep.mubr.msk.bf16.mxu0 %vm2311_vm0, %v2310_v2  ;;  %v634_v43 = vpack.c.bf16 %v633_v40, %v633_v40  ;;  %v2209_v40 = vld [vmem:[%s2741_s4] sm:$0xff]  }
 0x3d9   : > { %2042 = vmatprep.subr.bf16.mxu0 %v2310_v2  ;;  %v2238_v44 = vpop.eup %2237  ;;  %2109 = vmatpush3.bf16.msra.mxu1 %v2209_v40 }
 0x3da   : > { %v743_v49 = vmul.f32 %v2238_v44, %v2224_v8  ;;  %2110 = vmatprep.subr.bf16.mxu1 %v2310_v2 }
 0x3dc   : > { %v744_v52 = vpack.c.bf16 %v743_v49, %v743_v49 }
 0x3dd   : > { %v2240_v53 = vpop.eup %2239 }
 0x3de   : > { %v853_v57 = vmul.f32 %v2240_v53, %v2557_v10  ;;  %v2242_v59 = vpop.eup %2241 }
 0x3df   : > { %2033 = vmatmul.mubr.msk.bf16.vlgmr.msra.gmra.mrb[8].mxu0 %vm510_vm4, %v634_v43  ;;  %v963_v61 = vmul.f32 %v2242_v59, %v2544_v55 }
 0x3e0   : > { %2043 = vmatpush3.bf16.msra.mxu0 %v751_v47  ;;  %2044 = vmatprep.mubr.msk.bf16.mxu0 %vm2311_vm0, %v2310_v2  ;;  %v854_v58 = vpack.c.bf16 %v853_v57, %v853_v57  ;;  %v2210_v47 = vld [vmem:[%s2741_s4 + $0x8] sm:$0xff]  }
 0x3e1   : > { %2054 = vmatprep.subr.bf16.mxu0 %v2310_v2  ;;  %v964_v50 = vpack.c.bf16 %v963_v61, %v963_v61  ;;  %2111 = vmatpush3.bf16.msra.mxu1 %v2210_v47  ;;  %v1479_v47 = vsub.s32 7, %v2419_v4 }
 0x3e2   : > { %2124 = vmatprep.subr.bf16.mxu1 %v2310_v2 }
 0x3e4   : > { %1185 = vrot.lane.b32.xlu1 %v2532_v45, %s2334_s13 }
 0x3e5   : > { %1075 = vrot.lane.b32.xlu0 %v2532_v45, %s2335_s14 }
 0x3e7   : > { %2045 = vmatmul.mubr.msk.bf16.vlgmr.msra.gmra.mrb[12].mxu0 %vm510_vm4, %v744_v52 }
 0x3e8   : > { %2055 = vmatpush3.bf16.msra.mxu0 %v861_v54  ;;  %2056 = vmatprep.mubr.msk.bf16.mxu0 %vm2311_vm0, %v2310_v2 }
 0x3e9   : > { %1295 = vrot.lane.b32.xlu0 %v2532_v45, %s2336_s15  ;;  %2066 = vmatprep.subr.bf16.mxu0 %v2310_v2 }
 0x3ef   : > { %2057 = vmatmul.mubr.msk.bf16.vlgmr.msra.gmra.mrb[16].mxu0 %vm510_vm4, %v854_v58 }
 0x3f0   : > { %2067 = vmatpush3.bf16.msra.mxu0 %v971_v60  ;;  %2068 = vmatprep.mubr.msk.bf16.mxu0 %vm2311_vm0, %v2310_v2 }
 0x3f1   : > { %2078 = vmatprep.subr.bf16.mxu0 %v2310_v2 }
 0x3f7   : > { %2069 = vmatmul.mubr.msk.bf16.vlgmr.msra.gmra.mrb[20].mxu0 %vm510_vm4, %v964_v50 }
 0x3f8   : > { %2080 = vmatprep.mubr.msk.bf16.mxu0 %vm2311_vm0, %v2310_v2 }
 0x407   : > { %v1071_v45 = vpop.xlane.xlu1 %1070 }
 0x408   : > { %2243 = vrcp.f32 %v1071_v45 }
 0x412   : > { %v2244_v56 = vpop.eup %2243 }
 0x413   : > { %v1073_v0 = vmul.f32 %v2244_v56, %v2564_v15 }
 0x415   : > { %v1074_v55 = vpack.c.bf16 %v1073_v0, %v1073_v0 }
 0x45c   : > { %v1181_v63 = vpop.xlane.xlu0 %1180 }
 0x45d   : > { %2245 = vrcp.f32 %v1181_v63 }
 0x460   : > { %v1076_v62 = vpop.permute.xlu0 %1075  ;;  %v1291_v1 = vpop.xlane.xlu1 %1290 }
 0x461   : > { %v1081_v3 = vsel %vm529_vm5, %v1076_v62, 0  ;;  %2247 = vrcp.f32 %v1291_v1 }
 0x462   : > { %2079 = vmatpush3.bf16.msra.mxu0 %v1081_v3 }
 0x463   : > { %2090 = vmatprep.subr.bf16.mxu0 %v2310_v2 }
 0x464   : > { %v1186_v8 = vpop.permute.xlu1 %1185  ;;  %v1296_v12 = vpop.permute.xlu0 %1295 }
 0x465   : > { %v1191_v9 = vsel %vm529_vm5, %v1186_v8, 0  ;;  %2081 = vmatmul.mubr.msk.bf16.vlgmr.msra.gmra.mrb[24].mxu0 %vm510_vm4, %v1074_v55  ;;  %v1301_v16 = vsel %vm529_vm5, %v1296_v12, 0  ;;  %v2651_v12 = vsub.s32 0, %v2419_v4 }
 0x466   : > { %2091 = vmatpush3.bf16.msra.mxu0 %v1191_v9  ;;  %2092 = vmatprep.mubr.msk.bf16.mxu0 %vm2311_vm0, %v2310_v2 }
 0x467   : > { %v2246_v10 = vpop.eup %2245  ;;  %2102 = vmatprep.subr.bf16.mxu0 %v2310_v2 }
 0x468   : > { %v1183_v11 = vmul.f32 %v2246_v10, %v2572_v29 }
 0x46a   : > { %v1184_v14 = vpack.c.bf16 %v1183_v11, %v1183_v11  ;;  %v1390_v11 = vsub.s32 4, %v2419_v4 }
 0x46b   : > { %v2248_v15 = vpop.eup %2247 }
 0x46c   : > { %v1293_v17 = vmul.f32 %v2248_v15, %v2576_v31  ;;  %v420_v15 = vrot.slane %v2425_v5, %v2651_v12 }
 0x46d   : > { %2093 = vmatmul.mubr.msk.bf16.vlgmr.msra.gmra.mrb[28].mxu0 %vm510_vm4, %v1184_v14  ;;  %v1391_v14 = vrot.slane %v2425_v5, %v1390_v11 }
 0x46e   : > { %2103 = vmatpush3.bf16.msra.mxu0 %v1301_v16  ;;  %2104 = vmatprep.mubr.msk.bf16.mxu0 %vm2311_vm0, %v2310_v2  ;;  %v1294_v18 = vpack.c.bf16 %v1293_v17, %v1293_v17 }
 0x46f   : > { %2116 = vmatprep.subr.bf16.mxu0 %v2310_v2 }
 0x475   : > { %2105 = vmatmul.mubr.msk.bf16.vlgmr.msra.gmra.mrb[32].mxu0 %vm510_vm4, %v1294_v18 }
 0x476   : > { %2120 = vmatprep.mubr.msk.bf16.mxu0 %vm2311_vm0, %v2310_v2 }
 0x4aa   : > { %v567_v19 = vpop.f32.mrb[4].mxu0 }
 0x4ab   : > { %v2022_v20 = vpop.f32.mrb[5].mxu0 }
 0x4ac   : > { %v570_v21 = vpop.f32.mrb[6].mxu0 }
 0x4ad   : > { %v2023_v22 = vpop.f32.mrb[7].mxu0 }
 0x4b2   : > { %v677_v23 = vpop.f32.mrb[8].mxu0 }
 0x4b3   : > { %1344 = vrot.lane.b32.xlu0 %v677_v23, %s2336_s15  ;;  %v2034_v24 = vpop.f32.mrb[9].mxu0 }
 0x4b4   : > { %v680_v25 = vpop.f32.mrb[10].mxu0 }
 0x4b5   : > { %v2035_v26 = vpop.f32.mrb[11].mxu0 }
 0x4ba   : > { %v787_v27 = vpop.f32.mrb[12].mxu0 }
 0x4bb   : > { %1348 = vrot.lane.b32.xlu0 %v787_v27, %s2334_s13  ;;  %v2046_v29 = vpop.f32.mrb[13].mxu0 }
 0x4bc   : > { %v790_v30 = vpop.f32.mrb[14].mxu0 }
 0x4bd   : > { %v2047_v31 = vpop.f32.mrb[15].mxu0  ;;  %v2211_v30 = vld [vmem:[%s2742_s5] sm:$0xff]  }
 0x4be   : > { %2117 = vmatpush3.bf16.msra.mxu0 %v2211_v30 }
 0x4bf   : > { %2118 = vmatprep.subr.bf16.mxu0 %v2310_v2 }
 0x4c2   : > { %v897_v28 = vpop.f32.mrb[16].mxu0 }
 0x4c3   : > { %1352 = vrot.lane.b32.xlu0 %v897_v28, %s2335_s14  ;;  %v2058_v32 = vpop.f32.mrb[17].mxu0 }
 0x4c4   : > { %v900_v34 = vpop.f32.mrb[18].mxu0 }
 0x4c5   : > { %v2059_v33 = vpop.f32.mrb[19].mxu0  ;;  %v1464_v34 = vsub.s32 5, %v2419_v4 }
 0x4c6   : > { %v1469_v33 = vsub.s32 6, %v2419_v4  ;;  %v1708_v4 = vld [vmem:[%s2746_s9] sm:$0xf] }
 0x4ca   : > { %v1007_v35 = vpop.f32.mrb[20].mxu0 }
 0x4cb   : > { %1356 = vrot.lane.b32.xlu0 %v1007_v35, %s2331_s30  ;;  %v2070_v37 = vpop.f32.mrb[21].mxu0  ;;  %v1465_v35 = vrot.slane %v2425_v5, %v1464_v34 }
 0x4cc   : > { %v1010_v38 = vpop.f32.mrb[22].mxu0 }
 0x4cd   : > { %v2071_v39 = vpop.f32.mrb[23].mxu0 }
 0x4ce   : > { %v1470_v39 = vrot.slane %v2425_v5, %v1469_v33 }
 0x525   : > { %v1345_v59 = vpop.permute.xlu0 %1344 }
 0x526   : > { %v1371_v45 = vsel %vm463_vm2, %v567_v19, %v1345_v59  ;;  %v421_v19 = vadd.f32 %v420_v15, %v2449_v13  ;;  %v2212_v13 = vld [vmem:[%s2742_s5 + $0x8] sm:$0xff]  }
 0x527   : > { %2119 = vmatpush3.bf16.msra.mxu0 %v2212_v13  ;;  %v355_v59 = vld [vmem:[%s2745_s8 + $0x8] sm:$0xf] }
 0x528   : > { %2132 = vmatprep.subr.bf16.mxu0 %v2310_v2 }
 0x52d   : > { %v1349_v60 = vpop.permute.xlu0 %1348 }
 0x52e   : > { %v1372_v56 = vsel %vm510_vm4, %v1371_v45, %v1349_v60  ;;  %v1545_v60 = vrot.slane %v355_v59, %v2651_v12 }
 0x535   : > { %v1353_v61 = vpop.permute.xlu0 %1352 }
 0x536   : > { %v1374_v0 = vsel %vm1373_vm6, %v1372_v56, %v1353_v61 }
 0x538   : > { %v1117_v41 = vpop.f32.mrb[24].mxu0 }
 0x539   : > { %1360 = vrot.lane.b32.xlu1 %v1117_v41, %s2333_s11  ;;  %v2082_v42 = vpop.f32.mrb[25].mxu0 }
 0x53a   : > { %v1120_v43 = vpop.f32.mrb[26].mxu0 }
 0x53b   : > { %v2083_v44 = vpop.f32.mrb[27].mxu0  ;;  %v2213_v43 = vld [vmem:[%s2743_s6] sm:$0xff]  }
 0x53c   : > { %v2214_v44 = vld [vmem:[%s2743_s6 + $0x8] sm:$0xff]  }
 0x53d   : > { %v1357_v50 = vpop.permute.xlu0 %1356 }
 0x53e   : > { %v1376_v1 = vsel %vm1375_vm7, %v1374_v0, %v1357_v50 }
 0x540   : > { %v1227_v48 = vpop.f32.mrb[28].mxu0 }
 0x541   : > { %1364 = vrot.lane.b32.xlu0 %v1227_v48, %s2330_s0  ;;  %v2094_v49 = vpop.f32.mrb[29].mxu0  ;;  %v1480_v48 = vrot.slane %v2425_v5, %v1479_v47 }
 0x542   : > { %v1230_v51 = vpop.f32.mrb[30].mxu0 }
 0x543   : > { %v2095_v52 = vpop.f32.mrb[31].mxu0 }
 0x548   : > { %v1337_v53 = vpop.f32.mrb[32].mxu0 }
 0x549   : > { %1368 = vrot.lane.b32.xlu1 %v1337_v53, %s2332_s12  ;;  %v2106_v54 = vpop.f32.mrb[33].mxu0 }
 0x54a   : > { %v1340_v57 = vpop.f32.mrb[34].mxu0 }
 0x54b   : > { %v2107_v58 = vpop.f32.mrb[35].mxu0 }
 0x5ab   : > { %v1361_v63 = vpop.permute.xlu1 %1360 }
 0x5ac   : > { %v1378_v3 = vsel %vm1377_vm8, %v1376_v1, %v1361_v63 }
 0x5b3   : > { %v1365_v62 = vpop.permute.xlu0 %1364 }
 0x5b4   : > { %v1380_v55 = vsel %vm1379_vm9, %v1378_v3, %v1365_v62 }
 0x5bb   : > { %v1369_v8 = vpop.permute.xlu1 %1368 }
 0x5bc   : > { %v1382_v9 = vsel %vm1381_vm10, %v1380_v55, %v1369_v8 }
 0x5bd   : > { %v1383_v10 = vpack.c.bf16 %v1382_v9, %v1382_v9  ;;  %v2215_v9 = vld [vmem:[%s2744_s7] sm:$0xff]  }
 0x5bf   : > { %2113 = vmatmul.mubr.msk.bf16.vlgmr.msra.gmra.mrb[32].mxu1 %vm373_vm1, %v1383_v10  ;;  %v2216_v10 = vld [vmem:[%s2744_s7 + $0x8] sm:$0xff]  }
 0x5c0   : > { %2128 = vmatprep.mubr.msk.bf16.mxu1 %vm2311_vm0, %v2310_v2  ;;  %2125 = vmatpush3.bf16.msra.mxu1 %v2213_v43 }
 0x5c1   : > { %2126 = vmatprep.subr.bf16.mxu1 %v2310_v2 }
 0x5c4   : > { %2127 = vmatpush3.bf16.msra.mxu1 %v2214_v44 }
 0x692   : > { %v1441_v16 = vpop.f32.mrb[32].mxu1 }
 0x693   : > { %v1442_v17 = vadd.f32 %v1441_v16, %v1391_v14  ;;  %v2114_v18 = vpop.f32.mrb[33].mxu1  ;;  %v1618_v16 = vrot.slane %v355_v59, %v424_v7  ;;  %v1639_v7 = vrot.slane %v355_v59, %v442_v36  ;;  %v1710_v36 = vsel %vm1709_vm12, %v1708_v4, -inf }
 0x694   : > { %v1444_v20 = vpop.f32.mrb[34].mxu1  ;;  %v1623_v18 = vrot.slane %v355_v59, %v433_v6 }
 0x695   : > { %v2115_v21 = vpop.f32.mrb[35].mxu1  ;;  %v1447_v22 = vadd.f32 %v1442_v17, %v421_v19 }
 0x696   : > { %v1946_v21 = vsel %vm1627_vm11, 1.0, %v2310_v2 }
 0x697   : > { %v1448_v23 = vsel %vm373_vm1, %v1447_v22, 0.0 }
 0x698   : > { %1449 = vadd.xlane.f32.xlu0 %v1448_v23 }
 0x725   : > { %v1450_v24 = vpop.xlane.xlu0 %1449 }
 0x726   : > { %v1452_v25 = vmul.f32 0.03125, %v1450_v24 }
 0x728   : > { %v1453_v26 = vsub.f32 %v1447_v22, %v1452_v25  ;;  %v1696_v25 = vld [vmem:[%s347_s22] sm:$0xff] }
 0x72a   : > { %v1454_v27 = vmul.f32 %v1453_v26, %v1453_v26 }
 0x72c   : > { %v1455_v29 = vsel %vm373_vm1, %v1454_v27, 0.0 }
 0x72d   : > { %1456 = vadd.xlane.f32.xlu1 %v1455_v29 }
 0x7ba   : > { %v1457_v31 = vpop.xlane.xlu1 %1456 }
 0x7bb   : > { %v1458_v28 = vmul.f32 0.03125, %v1457_v31 }
 0x7bd   : > { %v1459_v32 = vadd.f32 1e-05, %v1458_v28 }
 0x7bf   : > { %2249 = vrsqrt.f32 %v1459_v32 }
 0x7c9   : > { %v2250_v37 = vpop.eup %2249 }
 0x7ca   : > { %v1461_v38 = vmul.f32 %v2250_v37, %v1453_v26  ;;  %v1711_v37 = vrot.slane %v1710_v36, 4 }
 0x7cc   : > { %v1466_v40 = vmul.f32 %v1465_v35, %v1461_v38  ;;  %v1712_v38 = vmax.f32 %v1710_v36, %v1711_v37 }
 0x7ce   : > { %v1471_v41 = vadd.f32 %v1470_v39, %v1466_v40  ;;  %v1713_v39 = vrot.slane %v1712_v38, 2 }
 0x7d0   : > { %v1472_v42 = vpack.c.bf16 %v1471_v41, %v1471_v41  ;;  %v1714_v40 = vmax.f32 %v1712_v38, %v1713_v39 }
 0x7d2   : > { %2121 = vmatmul.mubr.msk.bf16.vlgmr.msra.gmra.mrb[36].mxu0 %vm373_vm1, %v1472_v42 }
 0x7d3   : > { %2136 = vmatprep.mubr.msk.bf16.mxu0 %vm2311_vm0, %v2310_v2  ;;  %2133 = vmatpush3.bf16.msra.mxu0 %v2215_v9 }
 0x7d4   : > { %2134 = vmatprep.subr.bf16.mxu0 %v2310_v2 }
 0x7d7   : > { %2135 = vmatpush3.bf16.msra.mxu0 %v2216_v10 }
 0x8a5   : > { %v1530_v49 = vpop.f32.mrb[36].mxu0 }
 0x8a6   : > { %v1531_v51 = vadd.f32 %v1530_v49, %v1480_v48  ;;  %v2122_v52 = vpop.f32.mrb[37].mxu0 }
 0x8a7   : > { %v1533_v53 = vpop.f32.mrb[38].mxu0 }
 0x8a8   : > { %v1536_v54 = vmax.f32 %v1531_v51, 0.0  ;;  %v2123_v57 = vpop.f32.mrb[39].mxu0 }
 0x8aa   : > { %v1537_v58 = vpack.c.bf16 %v1536_v54, %v1536_v54 }
 0x8ac   : > { %2129 = vmatmul.mubr.msk.bf16.vlgmr.msra.gmra.mrb[36].mxu1 %vm373_vm1, %v1537_v58 }
 0x97f   : > { %v1595_v61 = vpop.f32.mrb[36].mxu1 }
 0x980   : > { %v1596_v50 = vadd.f32 %v1595_v61, %v1545_v60  ;;  %v2130_v45 = vpop.f32.mrb[37].mxu1 }
 0x981   : > { %v1598_v56 = vpop.f32.mrb[38].mxu1 }
 0x982   : > { %v2131_v5 = vpop.f32.mrb[39].mxu1  ;;  %v1601_v63 = vadd.f32 %v1596_v50, %v1471_v41  ;;  %v1715_v41 = vrot.slane %v1714_v40, 1 }
 0x984   : > { %v1602_v0 = vsel %vm373_vm1, %v1601_v63, 0.0  ;;  %v1716_v42 = vmax.f32 %v1714_v40, %v1715_v41 }
 0x985   : > { %1603 = vadd.xlane.f32.xlu0 %v1602_v0 }
 0x986   : > { %v1717_v43 = vsub.f32 %v1708_v4, %v1716_v42 }
 0x988   : > { %v1718_v44 = vmul.f32 1.442695, %v1717_v43 }
 0xa12   : > { %v1604_v62 = vpop.xlane.xlu0 %1603 }
 0xa13   : > { %v1605_v1 = vmul.f32 0.03125, %v1604_v62 }
 0xa15   : > { %v1606_v3 = vsub.f32 %v1601_v63, %v1605_v1 }
 0xa17   : > { %v1607_v55 = vmul.f32 %v1606_v3, %v1606_v3 }
 0xa19   : > { %v1608_v8 = vsel %vm373_vm1, %v1607_v55, 0.0 }
 0xa1a   : > { %1609 = vadd.xlane.f32.xlu0 %v1608_v8 }
 0xaa7   : > { %v1610_v11 = vpop.xlane.xlu0 %1609 }
 0xaa8   : > { %v1611_v14 = vmul.f32 0.03125, %v1610_v11 }
 0xaaa   : > { %v1612_v15 = vadd.f32 1e-05, %v1611_v14 }
 0xaac   : > { %2251 = vrsqrt.f32 %v1612_v15 }
 0xaad   : > { %2253 = vpow2.f32 %v1718_v44 }
 0xab6   : > { %v2252_v17 = vpop.eup %2251 }
 0xab7   : > { %v1614_v19 = vmul.f32 %v2252_v17, %v1606_v3  ;;  %v2254_v47 = vpop.eup %2253 }
 0xab9   : > { %v1619_v20 = vmul.f32 %v1618_v16, %v1614_v19 }
 0xabb   : > { %v1624_v22 = vadd.f32 %v1623_v18, %v1619_v20 }
 0xabd   : > { %v1630_v23 = vmul.f32 %v1946_v21, %v1624_v22 }
 0xabf   : > { %v1631_v24 = vpack.c.bf16 %v1630_v23, %v1630_v23 }
 0xac1   : > { %2137 = vmatmul.mubr.msk.bf16.vlgmr.msra.gmra.mrb[40].mxu0 %vm373_vm1, %v1631_v24 }
 0xb94   : > { %v1689_v6 = vpop.f32.mrb[40].mxu0 }
 0xb95   : > { %v1690_v26 = vadd.f32 %v1689_v6, %v1639_v7   ;;  %v2138_v27 = vpop.f32.mrb[41].mxu0 }
 0xb96   : > { %v1692_v46 = vpop.f32.mrb[42].mxu0 }
 0xb97   : > { %1695 = vst.msk [vmem:[#allocation2] sm:$0xff] %vm463_vm2, %v1690_v26  ;;  %v1697_v2 = vmul.f32 %v1696_v25, %v1690_v26  ;;  %v2139_v29 = vpop.f32.mrb[43].mxu0  ;;  %v2305_v49 = vmov %v1690_v26   ;;  %v2297_v51 = vmov (!%p1950_p9), %v1690_v26  }
 0xb99   : > { %v1698_v30 = vsel %vm463_vm2, %v1697_v2, 0.0 }
 0xb9a   : > { %v1699_v13 = vrot.slane %v1698_v30, 4 }
 0xb9c   : > { %v1700_v31 = vadd.f32 %v1699_v13, %v1698_v30 }
 0xb9e   : > { %v1701_v28 = vrot.slane %v1700_v31, 2 }
 0xba0   : > { %v1702_v32 = vadd.f32 %v1701_v28, %v1700_v31 }
 0xba2   : > { %v1703_v34 = vrot.slane %v1702_v32, 1 }
 0xba4   : > { %v1704_v33 = vadd.f32 %v1703_v34, %v1702_v32 }
 0xba6   : > { %v1705_v35 = vsel %vm463_vm2, %v1704_v33, 0.0 }
 0xba7   : > { %1706 = vadd.xlane.f32.xlu1 %v1705_v35 }
 0xc2e   : > { %1879 = sbr.rel (%p1950_p9) target bundleno = 3516 (0xdbc), region = 91 }
 0xc34   : > { %v1707_v48 = vpop.xlane.xlu1 %1706 }
 0xc35 LB: >> { %vm1729_vm13 = vcmask 24576   ;;  %v2337_v53 = vmov 0.0   ;;  %vm2338_vm14 = vmmov 0   ;;  %s1727_s27 = scalar_lea.vmem [#allocation2], %s2303_s26  ;;  %s1723_s26 = sadd.s32 1, %s2303_s26   ;;  %s2303_s26 = sphi %s2724_s26, %s1723_s26   ;;  %v2299_v51 = vphi %v2297_v51, %v2298_v51  }
 0xc36   : >> { %v1730_v52 = vsel %vm1729_vm13, %v2299_v51, -inf  ;;  %2140 = vmatprep.subr.mxu0 %v2337_v53  ;;  %2142 = vmatprep.mubr.msk.f32.mxu0 %vm2338_vm14, %v2337_v53  ;;  %v1728_v5 = vld [vmem:[%s1727_s27] sm:$0x1]  ;;  %p1722_p10 = scmp.ge.s32.totalorder %s1723_s26, %s2495_s29 }
 0xc37   : >> { %1731 = vmax.xlane.f32.xlu0 %v1730_v52  ;;  %2141 = vmatpush3.msk.msra.mxu0 %vm529_vm5, %v2254_v47 }
 0xcc4   : >> { %v1732_v54 = vpop.xlane.xlu0 %1731 }
 0xcc5   : >> { %v1733_v57 = vsub.f32 %v2299_v51, %v1732_v54 }
 0xcc7   : >> { %v1734_v58 = vmul.f32 1.442695, %v1733_v57 }
 0xcc9   : >> { %2255 = vpow2.f32 %v1734_v58 }
 0xcd3   : >> { %v2256_v59 = vpop.eup %2255 }
 0xcd4   : >> { %2143 = vmatmul.mubr.msk.f32.vlgmr.msra.gmra.mrb[0].mxu0 %vm463_vm2, %v2256_v59 }
 0xda7   : >> { %v1808_v60 = vpop.f32.mrb[0].mxu0 }
 0xda8   : >> { %2257 = vlog2.f32 %v1808_v60  ;;  %v2144_v61 = vpop.f32.mrb[1].mxu0 }
 0xdb2   : >> { %v2258_v50 = vpop.eup %2257 }
 0xdb3   : >> { %v1813_v45 = vmul.f32 0.6931472, %v2258_v50 }
 0xdb5   : >> { %v1814_v56 = vadd.f32 %v1813_v45, %v1732_v54  ;;  %1725 = sbr.rel (!%p1722_p10) target bundleno = 3125 (0xc35), region = 97 }
 0xdb7   : >> { %v1815_v63 = vadd.f32 %v1814_v56, %v1716_v42 }
 0xdb9   : >> { %v1816_v0 = vadd.f32 %v1815_v63, %v1728_v5  }
 0xdbb   : >> { %v2298_v51 = vmov %v1816_v0   ;;  %v2306_v49 = vmov (%p1722_p10), %v1816_v0  }
 0xdbc PF: > { %vm1817_vm15 = vcmask 24576   ;;  %v2307_v49 = vphi %v2305_v49, %v2306_v49  }
 0xdbd   : > { %v1818_v62 = vsel %vm1817_vm15, %v2307_v49, -inf }
 0xdbe   : > { %1819 = vmax.xlane.f32.xlu0 %v1818_v62 }
 0xe4b   : > { %v1820_v1 = vpop.xlane.xlu0 %1819 }
 0xe4c   : > { %v1821_v3 = vsub.f32 %v2307_v49, %v1820_v1 }
 0xe4e   : > { %v1822_v55 = vmul.f32 1.442695, %v1821_v3 }
 0xe50   : > { %2259 = vpow2.f32 %v1822_v55 }
 0xe5a   : > { %v2260_v8 = vpop.eup %2259 }
 0xe5b   : > { %v1824_v9 = vsel %vm1817_vm15, %v2260_v8, 0.0 }
 0xe5c   : > { %1825 = vadd.xlane.f32.xlu0 %v1824_v9 }
 0xee9   : > { %v1826_v10 = vpop.xlane.xlu0 %1825 }
 0xeea   : > { %2261 = vlog2.f32 %v1826_v10 }
 0xef4   : > { %v2262_v11 = vpop.eup %2261 }
 0xef5   : > { %v1828_v14 = vmul.f32 0.6931472, %v2262_v11 }
 0xef7   : > { %v1829_v15 = vadd.f32 %v1828_v14, %v1820_v1 }
 0xef9   : > { %v1830_v16 = vsub.f32 %v1829_v15, %v1707_v48 }
 0xefb   : > { %v1834_v17 = vrot.slane %v1830_v16, %v2651_v12 }
 0xefd   : > { %1835 = vst [vmem:[%s2701_s20] sm:$0xff] %v1834_v17 }
 0xefe PF: > { %s26_s18 = sadd.s32 1, %s2295_s18  }
 0xeff   : > { %p23_p11 = scmp.ge.s32.totalorder %s26_s18, 4  }
 0xf01   :  { %25 = sbr.rel (!%p23_p11) target bundleno = 16 (0x10), region = 108 }

</bundles_post_ra>
